<compile_context>
chip_gen: v7x
topology: tpu7x:2x2x1
jax: 0.10.0
libtpu: 0.0.40
codegen_flags: <defaults>
</compile_context>

<pallas_src>
import jax
import jax.numpy as jnp
import numpy as np
from jax.experimental import pallas as pl
from jax.experimental.pallas import tpu as pltpu


def _round_up(v, m):
    return (v + m - 1) // m * m


def _pad_to(a, shape):
    return jnp.pad(a, [(0, t - s) for s, t in zip(a.shape, shape)])


# ------------------------------ fused kernel ---------------------------------
# grid = (num_layers, num_edge_tiles); both axes sequential ("arbitrary"):
#   layer axis carries h (bf16 VMEM scratch), edge axis carries the aggregator.
def _gnn_fused_kernel(h0_ref, row_ref, col_ref, norm_ref, ea_ref, inv_deg_ref,
                      w_lin_ref, b_lin_ref, w_edge_ref, b_edge_ref,
                      root_ref, bn_sc_ref, bn_sh_ref,
                      o_ref,
                      h_ref, xlin_ref, xlin_bf_ref, aggr_ref):
    l = pl.program_id(0)
    et = pl.program_id(1)
    num_layers = pl.num_programs(0)
    n_et = pl.num_programs(1)
    n_p = aggr_ref.shape[0]
    te = row_ref.shape[0]

    # ---- layer prologue (once per layer): x_lin, its bf16 copy, zero aggr ---
    @pl.when(et == 0)
    def _layer_begin():
        @pl.when(l == 0)
        def _():                       # node-encoder output precomputed in glue
            h_ref[...] = h0_ref[...]

        xlin = (jnp.dot(h_ref[...], w_lin_ref[...],
                        preferred_element_type=jnp.float32) + b_lin_ref[...])
        xlin_ref[...] = xlin                            # f32, layer epilogue
        xlin_bf_ref[...] = xlin.astype(jnp.bfloat16)    # bf16 MXU operand, cast
                                                        # ONCE per layer (hoisted
                                                        # out of the edge loop)
        aggr_ref[...] = jnp.zeros_like(aggr_ref)

    # ---- per edge tile: edge encoder, gather, message, scatter-add ----------
    e_emb = (jnp.dot(ea_ref[...], w_edge_ref[...],
                     preferred_element_type=jnp.float32) + b_edge_ref[...])

    # 0/1 gather operand (TE, N) rebuilt in-kernel from int32 row indices.
    # Padded edges carry index == n_p (out of range) -> all-zero row.
    iota_row = jax.lax.broadcasted_iota(jnp.int32, (te, n_p), 1)
    g_row = jnp.where(row_ref[...] == iota_row, 1.0, 0.0).astype(jnp.bfloat16)
    x_j = jnp.dot(g_row, xlin_bf_ref[...], preferred_element_type=jnp.float32)

    msg = norm_ref[...] * jnp.maximum(x_j + e_emb, 0.0)      # f32 VPU epilogue

    # 0/1 scatter operand (N, TE) rebuilt from int32 col indices (laid out 1xTE
    # so no in-kernel transpose is needed); contraction depth = TE (>=256).
    iota_col = jax.lax.broadcasted_iota(jnp.int32, (n_p, te), 0)
    s_col = jnp.where(col_ref[...] == iota_col, 1.0, 0.0).astype(jnp.bfloat16)
    aggr_ref[...] += jnp.dot(s_col, msg.astype(jnp.bfloat16),
                             preferred_element_type=jnp.float32)

    # ---- layer epilogue: combine, BN affine, relu (except last), update h ---
    @pl.when(et == n_et - 1)
    def _layer_end():
        out = (aggr_ref[...]
               + jnp.maximum(xlin_ref[...] + root_ref[...], 0.0)
               * inv_deg_ref[...])
        out = out * bn_sc_ref[...] + bn_sh_ref[...]
        is_last = l == num_layers - 1

        @pl.when(jnp.logical_not(is_last))
        def _():
            h_ref[...] = jnp.maximum(out, 0.0).astype(jnp.bfloat16)

        @pl.when(is_last)
        def _():
            o_ref[...] = out           # no relu on final layer; dropout = id


# --------------------------- full GNN_node forward ---------------------------
def gnn_node_forward(x, edge_index, edge_attr, params, *, edge_tile=None,
                     interpret=False):
    n, _ = x.shape
    e, f_edge = edge_attr.shape
    num_layers = params["w_lin"].shape[0]
    emb = params["w_lin"].shape[-1]

    n_p = _round_up(n, 128)
    d_p = _round_up(emb, 128)
    # v6e/v7x have 256-wide MXUs: pad to 256 only when emb is already close.
    if d_p % 256 != 0 and (_round_up(emb, 256) - emb) <= max(emb // 8, 1):
        d_p = _round_up(emb, 256)
    fe_p = _round_up(f_edge, 128)

    if edge_tile is None:
        e_128 = _round_up(max(e, 1), 128)
        # single resident edge tile when small (no per-layer re-streaming),
        # otherwise 512-edge tiles (deep MXU contraction, amortized per-tile
        # accumulator RMW + ~0.35us pipeline step cost).
        edge_tile = e_128 if e_128 <= 4096 else 512
    edge_tile = _round_up(edge_tile, 128)
    e_p = _round_up(max(e, 1), edge_tile)
    n_et = e_p // edge_tile

    # ---- layer-invariant graph quantities + node encoder, computed once -----
    row, col = edge_index[0], edge_index[1]
    deg = jax.ops.segment_sum(jnp.ones((e,), jnp.float32), row,
                              num_segments=n) + 1.0
    dis = deg ** -0.5
    norm = dis[row] * dis[col]                                     # (E,)
    inv_deg = 1.0 / deg                                            # (N,)

    h0 = x @ params["node_enc_w"] + params["node_enc_b"]           # f32 glue
    h0_p = _pad_to(h0, (n_p, d_p)).astype(jnp.bfloat16)

    pad_idx = jnp.full((e_p - e,), n_p, dtype=jnp.int32)           # out of range
    row_p = jnp.concatenate([row.astype(jnp.int32), pad_idx]).reshape(e_p, 1)
    col_p = jnp.concatenate([col.astype(jnp.int32), pad_idx]).reshape(1, e_p)
    norm_p = jnp.pad(norm, (0, e_p - e)).reshape(e_p, 1)
    inv_deg_p = jnp.pad(inv_deg, (0, n_p - n),
                        constant_values=1.0).reshape(n_p, 1)
    ea_p = _pad_to(edge_attr, (e_p, fe_p)).astype(jnp.bfloat16)

    # ---- padded / bf16 parameters (stacked over layers) ---------------------
    w_lin = _pad_to(params["w_lin"], (num_layers, d_p, d_p)).astype(jnp.bfloat16)
    b_lin = _pad_to(params["b_lin"], (num_layers, 1, d_p))
    w_edge = _pad_to(params["w_edge"], (num_layers, fe_p, d_p)).astype(jnp.bfloat16)
    b_edge = _pad_to(params["b_edge"], (num_layers, 1, d_p))
    root = _pad_to(params["root"], (num_layers, 1, d_p))
    bn_sc = _pad_to(params["bn_scale"], (num_layers, 1, d_p))
    bn_sh = _pad_to(params["bn_shift"], (num_layers, 1, d_p))

    const2 = lambda l, et: (0, 0)
    layer3 = lambda l, et: (l, 0, 0)

    in_specs = [
        pl.BlockSpec((n_p, d_p), const2),                        # h0 (bf16)
        pl.BlockSpec((edge_tile, 1), lambda l, et: (et, 0)),     # row indices
        pl.BlockSpec((1, edge_tile), lambda l, et: (0, et)),     # col indices
        pl.BlockSpec((edge_tile, 1), lambda l, et: (et, 0)),     # norm
        pl.BlockSpec((edge_tile, fe_p), lambda l, et: (et, 0)),  # edge_attr
        pl.BlockSpec((n_p, 1), const2),                          # 1/deg
        pl.BlockSpec((None, d_p, d_p), layer3),                  # w_lin
        pl.BlockSpec((None, 1, d_p), layer3),                    # b_lin
        pl.BlockSpec((None, fe_p, d_p), layer3),                 # w_edge
        pl.BlockSpec((None, 1, d_p), layer3),                    # b_edge
        pl.BlockSpec((None, 1, d_p), layer3),                    # root
        pl.BlockSpec((None, 1, d_p), layer3),                    # bn_scale
        pl.BlockSpec((None, 1, d_p), layer3),                    # bn_shift
    ]
    out_spec = pl.BlockSpec((n_p, d_p), const2)

    # ---- per-generation VMEM budget ------------------------------------------
    try:
        cap = pltpu.get_tpu_info().vmem_capacity_bytes
        vmem_limit = max(32 << 20, min(int(cap * 0.85), 100 << 20))
    except Exception:                                  # pragma: no cover
        vmem_limit = 48 << 20

    # ---- advisory cost estimate ----------------------------------------------
    flops = num_layers * (2 * n_p * d_p * d_p          # x_lin
                          + 2 * e_p * fe_p * d_p       # edge encoder
                          + 2 * e_p * n_p * d_p        # gather
                          + 2 * n_p * e_p * d_p)       # scatter
    edge_stream = e_p * (fe_p * 2 + 4 + 4 + 4)         # ea + row + col + norm
    layer_param = sum(int(a.size) * a.dtype.itemsize
                      for a in (w_lin, b_lin, w_edge, b_edge, root, bn_sc, bn_sh))
    once = int(h0_p.size) * 2 + int(inv_deg_p.size) * 4
    bytes_accessed = num_layers * edge_stream + layer_param + once + n_p * d_p * 4

    out_p = pl.pallas_call(
        _gnn_fused_kernel,
        grid=(num_layers, n_et),
        in_specs=in_specs,
        out_specs=out_spec,
        out_shape=jax.ShapeDtypeStruct((n_p, d_p), jnp.float32),
        scratch_shapes=[
            pltpu.VMEM((n_p, d_p), jnp.bfloat16),  # h (resident across layers)
            pltpu.VMEM((n_p, d_p), jnp.float32),   # x_lin (f32, epilogue only)
            pltpu.VMEM((n_p, d_p), jnp.bfloat16),  # x_lin bf16 (gather operand)
            pltpu.VMEM((n_p, d_p), jnp.float32),   # aggr accumulator
        ],
        compiler_params=pltpu.CompilerParams(
            dimension_semantics=("arbitrary", "arbitrary"),
            vmem_limit_bytes=vmem_limit),
        cost_estimate=pl.CostEstimate(flops=int(flops), transcendentals=0,
                                      bytes_accessed=int(bytes_accessed)),
        interpret=interpret,
    )(h0_p, row_p, col_p, norm_p, ea_p, inv_deg_p,
      w_lin, b_lin, w_edge, b_edge, root, bn_sc, bn_sh)

    return out_p[:n, :emb]


# ------------------------------ reference ------------------------------------
def reference_forward(x, edge_index, edge_attr, params):
    row, col = edge_index[0], edge_index[1]
    n = x.shape[0]
    h = x @ params["node_enc_w"] + params["node_enc_b"]
    num_layers = params["w_lin"].shape[0]
    deg = jax.ops.segment_sum(jnp.ones_like(row, jnp.float32), row, n) + 1.0
    dis = deg ** -0.5
    norm = dis[row] * dis[col]
    for l in range(num_layers):
        x_lin = h @ params["w_lin"][l] + params["b_lin"][l]
        e_emb = edge_attr @ params["w_edge"][l] + params["b_edge"][l]
        msg = norm[:, None] * jax.nn.relu(x_lin[row] + e_emb)
        aggr = jax.ops.segment_sum(msg, col, n)
        out = aggr + jax.nn.relu(x_lin + params["root"][l]) / deg[:, None]
        out = out * params["bn_scale"][l] + params["bn_shift"][l]
        if l != num_layers - 1:
            out = jax.nn.relu(out)
        h = out
    return h


# ------------------------------ param init -----------------------------------
def init_params(key, num_nodefeats, num_edgefeats, emb_dim, num_layer):
    def dense(k, fan_in, fan_out):
        scale = 1.0 / np.sqrt(fan_in)
        kw, kb = jax.random.split(k)
        w = jax.random.uniform(kw, (fan_in, fan_out), jnp.float32, -scale, scale)
        b = jax.random.uniform(kb, (1, fan_out), jnp.float32, -scale, scale)
        return w, b

    keys = jax.random.split(key, 1 + num_layer)
    ne_w, ne_b = dense(keys[0], num_nodefeats, emb_dim)
    bn_eps = 1e-5
    w_lin, b_lin, w_edge, b_edge = [], [], [], []
    root, bn_scale, bn_shift = [], [], []
    for l in range(num_layer):
        k1, k2, k3, k4, k5 = jax.random.split(keys[1 + l], 5)
        wl, bl = dense(k1, emb_dim, emb_dim)
        we, be = dense(k2, num_edgefeats, emb_dim)
        w_lin.append(wl); b_lin.append(bl)
        w_edge.append(we); b_edge.append(be)
        root.append(jax.random.normal(k3, (1, emb_dim), jnp.float32))
        gamma = 1.0 + 0.1 * jax.random.normal(k4, (1, emb_dim), jnp.float32)
        beta = 0.1 * jax.random.normal(k5, (1, emb_dim), jnp.float32)
        # eval-mode BN with fresh running stats (mean=0, var=1) folded to affine
        bn_scale.append(gamma / jnp.sqrt(1.0 + bn_eps))
        bn_shift.append(beta)
    stack = lambda xs: jnp.stack(xs, axis=0)
    return dict(node_enc_w=ne_w, node_enc_b=ne_b,
                w_lin=stack(w_lin), b_lin=stack(b_lin),
                w_edge=stack(w_edge), b_edge=stack(b_edge),
                root=stack(root), bn_scale=stack(bn_scale),
                bn_shift=stack(bn_shift))


# --------------------------------- main ---------------------------------------
if __name__ == "__main__":
    key = jax.random.PRNGKey(0)
    N, E, F_NODE, F_EDGE, EMB, N_LAYER = 16, 32, 8, 4, 32, 2

    k_x, k_ei, k_ea, k_p = jax.random.split(key, 4)
    x = jax.random.normal(k_x, (N, F_NODE), jnp.float32)
    edge_index = jax.random.randint(k_ei, (2, E), 0, N, dtype=jnp.int32)
    edge_attr = jax.random.normal(k_ea, (E, F_EDGE), jnp.float32)
    params = init_params(k_p, F_NODE, F_EDGE, EMB, N_LAYER)

    out = gnn_node_forward(x, edge_index, edge_attr, params)
    out = jax.block_until_ready(out)

    ref = reference_forward(x, edge_index, edge_attr, params)
    # bf16 MXU operands / bf16-resident h with f32 accumulation -> ~1% budget.
    np.testing.assert_allclose(np.asarray(out), np.asarray(ref),
                               rtol=5e-2, atol=5e-2)
    print("KERNEL_OK")
</pallas_src>

<mosaic_0001>
module attributes {stable_mosaic.version = 11 : i64} {
  func.func @_gnn_fused_kernel(%arg0: i32, %arg1: i32, %arg2: memref<128x128xbf16, #tpu.memory_space<vmem>>, %arg3: memref<128x1xi32, #tpu.memory_space<vmem>>, %arg4: memref<1x128xi32, #tpu.memory_space<vmem>>, %arg5: memref<128x1xf32, #tpu.memory_space<vmem>>, %arg6: memref<128x128xbf16, #tpu.memory_space<vmem>>, %arg7: memref<128x1xf32, #tpu.memory_space<vmem>>, %arg8: memref<1x128x128xbf16, #tpu.memory_space<vmem>>, %arg9: memref<1x1x128xf32, #tpu.memory_space<vmem>>, %arg10: memref<1x128x128xbf16, #tpu.memory_space<vmem>>, %arg11: memref<1x1x128xf32, #tpu.memory_space<vmem>>, %arg12: memref<1x1x128xf32, #tpu.memory_space<vmem>>, %arg13: memref<1x1x128xf32, #tpu.memory_space<vmem>>, %arg14: memref<1x1x128xf32, #tpu.memory_space<vmem>>, %arg15: memref<128x128xf32, #tpu.memory_space<vmem>>, %arg16: memref<128x128xbf16, #tpu.memory_space<vmem>>, %arg17: memref<128x128xf32, #tpu.memory_space<vmem>>, %arg18: memref<128x128xbf16, #tpu.memory_space<vmem>>, %arg19: memref<128x128xf32, #tpu.memory_space<vmem>>) attributes {dimension_semantics = [#tpu.dimension_semantics<arbitrary>, #tpu.dimension_semantics<arbitrary>], iteration_bounds = array<i64: 2, 1>, scalar_prefetch = 0 : i64, scratch_operands = 4 : i64, tpu.core_type = #tpu.core_type<tc>, window_params = [{pipeline_mode = #tpu.pipeline_mode<synchronous>, transform_indices = @transform_0, window_bounds = array<i64: 128, 128>}, {transform_indices = @transform_1, window_bounds = array<i64: 128, 1>}, {transform_indices = @transform_2, window_bounds = array<i64: 1, 128>}, {transform_indices = @transform_3, window_bounds = array<i64: 128, 1>}, {transform_indices = @transform_4, window_bounds = array<i64: 128, 128>}, {pipeline_mode = #tpu.pipeline_mode<synchronous>, transform_indices = @transform_5, window_bounds = array<i64: 128, 1>}, {transform_indices = @transform_6, window_bounds = array<i64: 1, 128, 128>}, {transform_indices = @transform_7, window_bounds = array<i64: 1, 1, 128>}, {transform_indices = @transform_8, window_bounds = array<i64: 1, 128, 128>}, {transform_indices = @transform_9, window_bounds = array<i64: 1, 1, 128>}, {transform_indices = @transform_10, window_bounds = array<i64: 1, 1, 128>}, {transform_indices = @transform_11, window_bounds = array<i64: 1, 1, 128>}, {transform_indices = @transform_12, window_bounds = array<i64: 1, 1, 128>}, {pipeline_mode = #tpu.pipeline_mode<synchronous>, transform_indices = @transform_13, window_bounds = array<i64: 128, 128>}]} {
    %c0_i32 = arith.constant 0 : i32
    %0 = arith.cmpi eq, %arg1, %c0_i32 : i32
    %1 = arith.extui %0 : i1 to i32
    %c0_i32_0 = arith.constant 0 : i32
    %2 = arith.cmpi ne, %1, %c0_i32_0 : i32
    scf.if %2 {
      %c0_i32_29 = arith.constant 0 : i32
      %43 = arith.cmpi eq, %arg0, %c0_i32_29 : i32
      %44 = arith.extui %43 : i1 to i32
      %c0_i32_30 = arith.constant 0 : i32
      %45 = arith.cmpi ne, %44, %c0_i32_30 : i32
      scf.if %45 {
        %c0_47 = arith.constant 0 : index
        %c0_48 = arith.constant 0 : index
        %59 = vector.load %arg2[%c0_47, %c0_48] : memref<128x128xbf16, #tpu.memory_space<vmem>>, vector<128x128xbf16>
        %c0_49 = arith.constant 0 : index
        %c0_50 = arith.constant 0 : index
        %60 = vector.load %arg16[%c0_49, %c0_50] : memref<128x128xbf16, #tpu.memory_space<vmem>>, vector<128x128xbf16>
        tpu.vector_store %arg16[%c0_49, %c0_50], %59 {strides = array<i32>} : memref<128x128xbf16, #tpu.memory_space<vmem>>, vector<128x128xbf16>,
      } else {
      }
      %c0_31 = arith.constant 0 : index
      %c0_32 = arith.constant 0 : index
      %46 = vector.load %arg16[%c0_31, %c0_32] : memref<128x128xbf16, #tpu.memory_space<vmem>>, vector<128x128xbf16>
      %c0_33 = arith.constant 0 : index
      %c0_34 = arith.constant 0 : index
      %c0_35 = arith.constant 0 : index
      %47 = vector.load %arg8[%c0_33, %c0_34, %c0_35] : memref<1x128x128xbf16, #tpu.memory_space<vmem>>, vector<1x128x128xbf16>
      %48 = vector.shape_cast %47 : vector<1x128x128xbf16> to vector<128x128xbf16>
      %cst_36 = arith.constant dense<0.000000e+00> : vector<128x128xf32>
      %49 = tpu.matmul %46, %48, %cst_36 {dimension_numbers = #tpu.dot_dimension_numbers<[1], [0], [0], [1], [0, 0, 1, 1], [], []>} : vector<128x128xbf16>, vector<128x128xbf16>, vector<128x128xf32> -> vector<128x128xf32>
      %c0_37 = arith.constant 0 : index
      %c0_38 = arith.constant 0 : index
      %c0_39 = arith.constant 0 : index
      %50 = vector.load %arg9[%c0_37, %c0_38, %c0_39] : memref<1x1x128xf32, #tpu.memory_space<vmem>>, vector<1x1x128xf32>
      %51 = vector.shape_cast %50 : vector<1x1x128xf32> to vector<1x128xf32>
      %52 = vector.broadcast %51 : vector<1x128xf32> to vector<128x128xf32>
      %53 = arith.addf %49, %52 : vector<128x128xf32>
      %c0_40 = arith.constant 0 : index
      %c0_41 = arith.constant 0 : index
      %54 = vector.load %arg17[%c0_40, %c0_41] : memref<128x128xf32, #tpu.memory_space<vmem>>, vector<128x128xf32>
      tpu.vector_store %arg17[%c0_40, %c0_41], %53 {strides = array<i32>} : memref<128x128xf32, #tpu.memory_space<vmem>>, vector<128x128xf32>,
      %55 = arith.truncf %53 : vector<128x128xf32> to vector<128x128xbf16>
      %c0_42 = arith.constant 0 : index
      %c0_43 = arith.constant 0 : index
      %56 = vector.load %arg18[%c0_42, %c0_43] : memref<128x128xbf16, #tpu.memory_space<vmem>>, vector<128x128xbf16>
      tpu.vector_store %arg18[%c0_42, %c0_43], %55 {strides = array<i32>} : memref<128x128xbf16, #tpu.memory_space<vmem>>, vector<128x128xbf16>,
      %cst_44 = arith.constant 0.000000e+00 : f32
      %57 = vector.broadcast %cst_44 : f32 to vector<128x128xf32>
      %c0_45 = arith.constant 0 : index
      %c0_46 = arith.constant 0 : index
      %58 = vector.load %arg19[%c0_45, %c0_46] : memref<128x128xf32, #tpu.memory_space<vmem>>, vector<128x128xf32>
      tpu.vector_store %arg19[%c0_45, %c0_46], %57 {strides = array<i32>} : memref<128x128xf32, #tpu.memory_space<vmem>>, vector<128x128xf32>,
    } else {
    }
    %c0 = arith.constant 0 : index
    %c0_1 = arith.constant 0 : index
    %3 = vector.load %arg6[%c0, %c0_1] : memref<128x128xbf16, #tpu.memory_space<vmem>>, vector<128x128xbf16>
    %c0_2 = arith.constant 0 : index
    %c0_3 = arith.constant 0 : index
    %c0_4 = arith.constant 0 : index
    %4 = vector.load %arg10[%c0_2, %c0_3, %c0_4] : memref<1x128x128xbf16, #tpu.memory_space<vmem>>, vector<1x128x128xbf16>
    %5 = vector.shape_cast %4 : vector<1x128x128xbf16> to vector<128x128xbf16>
    %cst = arith.constant dense<0.000000e+00> : vector<128x128xf32>
    %6 = tpu.matmul %3, %5, %cst {dimension_numbers = #tpu.dot_dimension_numbers<[1], [0], [0], [1], [0, 0, 1, 1], [], []>} : vector<128x128xbf16>, vector<128x128xbf16>, vector<128x128xf32> -> vector<128x128xf32>
    %c0_5 = arith.constant 0 : index
    %c0_6 = arith.constant 0 : index
    %c0_7 = arith.constant 0 : index
    %7 = vector.load %arg11[%c0_5, %c0_6, %c0_7] : memref<1x1x128xf32, #tpu.memory_space<vmem>>, vector<1x1x128xf32>
    %8 = vector.shape_cast %7 : vector<1x1x128xf32> to vector<1x128xf32>
    %9 = vector.broadcast %8 : vector<1x128xf32> to vector<128x128xf32>
    %10 = arith.addf %6, %9 : vector<128x128xf32>
    %11 = tpu.iota {dimensions = array<i32: 1>} : vector<128x128xi32>
    %c0_8 = arith.constant 0 : index
    %c0_9 = arith.constant 0 : index
    %12 = vector.load %arg3[%c0_8, %c0_9] : memref<128x1xi32, #tpu.memory_space<vmem>>, vector<128x1xi32>
    %13 = vector.broadcast %12 : vector<128x1xi32> to vector<128x128xi32>
    %14 = arith.cmpi eq, %13, %11 : vector<128x128xi32>
    %cst_10 = arith.constant 1.000000e+00 : f32
    %cst_11 = arith.constant 0.000000e+00 : f32
    %15 = vector.broadcast %cst_10 : f32 to vector<128x128xf32>
    %16 = vector.broadcast %cst_11 : f32 to vector<128x128xf32>
    %17 = arith.select %14, %15, %16 : vector<128x128xi1>, vector<128x128xf32>
    %18 = arith.truncf %17 : vector<128x128xf32> to vector<128x128xbf16>
    %c0_12 = arith.constant 0 : index
    %c0_13 = arith.constant 0 : index
    %19 = vector.load %arg18[%c0_12, %c0_13] : memref<128x128xbf16, #tpu.memory_space<vmem>>, vector<128x128xbf16>
    %cst_14 = arith.constant dense<0.000000e+00> : vector<128x128xf32>
    %20 = tpu.matmul %18, %19, %cst_14 {dimension_numbers = #tpu.dot_dimension_numbers<[1], [0], [0], [1], [0, 0, 1, 1], [], []>} : vector<128x128xbf16>, vector<128x128xbf16>, vector<128x128xf32> -> vector<128x128xf32>
    %c0_15 = arith.constant 0 : index
    %c0_16 = arith.constant 0 : index
    %21 = vector.load %arg5[%c0_15, %c0_16] : memref<128x1xf32, #tpu.memory_space<vmem>>, vector<128x1xf32>
    %22 = arith.addf %20, %10 : vector<128x128xf32>
    %cst_17 = arith.constant 0.000000e+00 : f32
    %23 = vector.broadcast %cst_17 : f32 to vector<128x128xf32>
    %24 = arith.maximumf %22, %23 : vector<128x128xf32>
    %25 = vector.broadcast %21 : vector<128x1xf32> to vector<128x128xf32>
    %26 = arith.mulf %25, %24 : vector<128x128xf32>
    %27 = tpu.iota {dimensions = array<i32: 0>} : vector<128x128xi32>
    %c0_18 = arith.constant 0 : index
    %c0_19 = arith.constant 0 : index
    %28 = vector.load %arg4[%c0_18, %c0_19] : memref<1x128xi32, #tpu.memory_space<vmem>>, vector<1x128xi32>
    %29 = vector.broadcast %28 : vector<1x128xi32> to vector<128x128xi32>
    %30 = arith.cmpi eq, %29, %27 : vector<128x128xi32>
    %cst_20 = arith.constant 1.000000e+00 : f32
    %cst_21 = arith.constant 0.000000e+00 : f32
    %31 = vector.broadcast %cst_20 : f32 to vector<128x128xf32>
    %32 = vector.broadcast %cst_21 : f32 to vector<128x128xf32>
    %33 = arith.select %30, %31, %32 : vector<128x128xi1>, vector<128x128xf32>
    %34 = arith.truncf %33 : vector<128x128xf32> to vector<128x128xbf16>
    %c0_22 = arith.constant 0 : index
    %c0_23 = arith.constant 0 : index
    %35 = vector.load %arg19[%c0_22, %c0_23] : memref<128x128xf32, #tpu.memory_space<vmem>>, vector<128x128xf32>
    %36 = arith.truncf %26 : vector<128x128xf32> to vector<128x128xbf16>
    %cst_24 = arith.constant dense<0.000000e+00> : vector<128x128xf32>
    %37 = tpu.matmul %34, %36, %cst_24 {dimension_numbers = #tpu.dot_dimension_numbers<[1], [0], [0], [1], [0, 0, 1, 1], [], []>} : vector<128x128xbf16>, vector<128x128xbf16>, vector<128x128xf32> -> vector<128x128xf32>
    %38 = arith.addf %35, %37 : vector<128x128xf32>
    %c0_25 = arith.constant 0 : index
    %c0_26 = arith.constant 0 : index
    %39 = vector.load %arg19[%c0_25, %c0_26] : memref<128x128xf32, #tpu.memory_space<vmem>>, vector<128x128xf32>
    tpu.vector_store %arg19[%c0_25, %c0_26], %38 {strides = array<i32>} : memref<128x128xf32, #tpu.memory_space<vmem>>, vector<128x128xf32>,
    %c0_i32_27 = arith.constant 0 : i32
    %40 = arith.cmpi eq, %arg1, %c0_i32_27 : i32
    %41 = arith.extui %40 : i1 to i32
    %c0_i32_28 = arith.constant 0 : i32
    %42 = arith.cmpi ne, %41, %c0_i32_28 : i32
    scf.if %42 {
      %c0_29 = arith.constant 0 : index
      %c0_30 = arith.constant 0 : index
      %43 = vector.load %arg19[%c0_29, %c0_30] : memref<128x128xf32, #tpu.memory_space<vmem>>, vector<128x128xf32>
      %c0_31 = arith.constant 0 : index
      %c0_32 = arith.constant 0 : index
      %44 = vector.load %arg17[%c0_31, %c0_32] : memref<128x128xf32, #tpu.memory_space<vmem>>, vector<128x128xf32>
      %c0_33 = arith.constant 0 : index
      %c0_34 = arith.constant 0 : index
      %c0_35 = arith.constant 0 : index
      %45 = vector.load %arg12[%c0_33, %c0_34, %c0_35] : memref<1x1x128xf32, #tpu.memory_space<vmem>>, vector<1x1x128xf32>
      %46 = vector.shape_cast %45 : vector<1x1x128xf32> to vector<1x128xf32>
      %47 = vector.broadcast %46 : vector<1x128xf32> to vector<128x128xf32>
      %48 = arith.addf %44, %47 : vector<128x128xf32>
      %cst_36 = arith.constant 0.000000e+00 : f32
      %49 = vector.broadcast %cst_36 : f32 to vector<128x128xf32>
      %50 = arith.maximumf %48, %49 : vector<128x128xf32>
      %c0_37 = arith.constant 0 : index
      %c0_38 = arith.constant 0 : index
      %51 = vector.load %arg7[%c0_37, %c0_38] : memref<128x1xf32, #tpu.memory_space<vmem>>, vector<128x1xf32>
      %52 = vector.broadcast %51 : vector<128x1xf32> to vector<128x128xf32>
      %53 = arith.mulf %50, %52 : vector<128x128xf32>
      %54 = arith.addf %43, %53 : vector<128x128xf32>
      %c0_39 = arith.constant 0 : index
      %c0_40 = arith.constant 0 : index
      %c0_41 = arith.constant 0 : index
      %55 = vector.load %arg13[%c0_39, %c0_40, %c0_41] : memref<1x1x128xf32, #tpu.memory_space<vmem>>, vector<1x1x128xf32>
      %56 = vector.shape_cast %55 : vector<1x1x128xf32> to vector<1x128xf32>
      %57 = vector.broadcast %56 : vector<1x128xf32> to vector<128x128xf32>
      %58 = arith.mulf %54, %57 : vector<128x128xf32>
      %c0_42 = arith.constant 0 : index
      %c0_43 = arith.constant 0 : index
      %c0_44 = arith.constant 0 : index
      %59 = vector.load %arg14[%c0_42, %c0_43, %c0_44] : memref<1x1x128xf32, #tpu.memory_space<vmem>>, vector<1x1x128xf32>
      %60 = vector.shape_cast %59 : vector<1x1x128xf32> to vector<1x128xf32>
      %61 = vector.broadcast %60 : vector<1x128xf32> to vector<128x128xf32>
      %62 = arith.addf %58, %61 : vector<128x128xf32>
      %c1_i32 = arith.constant 1 : i32
      %63 = arith.cmpi eq, %arg0, %c1_i32 : i32
      %true = arith.constant true
      %64 = arith.xori %63, %true : i1
      %65 = arith.extui %64 : i1 to i32
      %c0_i32_45 = arith.constant 0 : i32
      %66 = arith.cmpi ne, %65, %c0_i32_45 : i32
      scf.if %66 {
        %cst_47 = arith.constant 0.000000e+00 : f32
        %69 = vector.broadcast %cst_47 : f32 to vector<128x128xf32>
        %70 = arith.maximumf %62, %69 : vector<128x128xf32>
        %71 = arith.truncf %70 : vector<128x128xf32> to vector<128x128xbf16>
        %c0_48 = arith.constant 0 : index
        %c0_49 = arith.constant 0 : index
        %72 = vector.load %arg16[%c0_48, %c0_49] : memref<128x128xbf16, #tpu.memory_space<vmem>>, vector<128x128xbf16>
        tpu.vector_store %arg16[%c0_48, %c0_49], %71 {strides = array<i32>} : memref<128x128xbf16, #tpu.memory_space<vmem>>, vector<128x128xbf16>,
      } else {
      }
      %67 = arith.extui %63 : i1 to i32
      %c0_i32_46 = arith.constant 0 : i32
      %68 = arith.cmpi ne, %67, %c0_i32_46 : i32
      scf.if %68 {
        %c0_47 = arith.constant 0 : index
        %c0_48 = arith.constant 0 : index
        %69 = vector.load %arg15[%c0_47, %c0_48] : memref<128x128xf32, #tpu.memory_space<vmem>>, vector<128x128xf32>
        tpu.vector_store %arg15[%c0_47, %c0_48], %62 {strides = array<i32>} : memref<128x128xf32, #tpu.memory_space<vmem>>, vector<128x128xf32>,
      } else {
      }
    } else {
    }
    return
  }
  func.func @transform_0(%arg0: i32, %arg1: i32) -> (i32, i32) {
    %c0_i32 = arith.constant 0 : i32
    %c0_i32_0 = arith.constant 0 : i32
    %c0_i32_1 = arith.constant 0 : i32
    return %c0_i32, %c0_i32_0 : i32, i32
  }
  func.func @transform_1(%arg0: i32, %arg1: i32) -> (i32, i32) {
    %c0_i32 = arith.constant 0 : i32
    %c0_i32_0 = arith.constant 0 : i32
    return %arg1, %c0_i32 : i32, i32
  }
  func.func @transform_2(%arg0: i32, %arg1: i32) -> (i32, i32) {
    %c0_i32 = arith.constant 0 : i32
    %c0_i32_0 = arith.constant 0 : i32
    return %c0_i32, %arg1 : i32, i32
  }
  func.func @transform_3(%arg0: i32, %arg1: i32) -> (i32, i32) {
    %c0_i32 = arith.constant 0 : i32
    %c0_i32_0 = arith.constant 0 : i32
    return %arg1, %c0_i32 : i32, i32
  }
  func.func @transform_4(%arg0: i32, %arg1: i32) -> (i32, i32) {
    %c0_i32 = arith.constant 0 : i32
    %c0_i32_0 = arith.constant 0 : i32
    return %arg1, %c0_i32 : i32, i32
  }
  func.func @transform_5(%arg0: i32, %arg1: i32) -> (i32, i32) {
    %c0_i32 = arith.constant 0 : i32
    %c0_i32_0 = arith.constant 0 : i32
    %c0_i32_1 = arith.constant 0 : i32
    return %c0_i32, %c0_i32_0 : i32, i32
  }
  func.func @transform_6(%arg0: i32, %arg1: i32) -> (i32, i32, i32) {
    %c0_i32 = arith.constant 0 : i32
    %c0_i32_0 = arith.constant 0 : i32
    %c0_i32_1 = arith.constant 0 : i32
    return %arg0, %c0_i32, %c0_i32_0 : i32, i32, i32
  }
  func.func @transform_7(%arg0: i32, %arg1: i32) -> (i32, i32, i32) {
    %c0_i32 = arith.constant 0 : i32
    %c0_i32_0 = arith.constant 0 : i32
    %c0_i32_1 = arith.constant 0 : i32
    return %arg0, %c0_i32, %c0_i32_0 : i32, i32, i32
  }
  func.func @transform_8(%arg0: i32, %arg1: i32) -> (i32, i32, i32) {
    %c0_i32 = arith.constant 0 : i32
    %c0_i32_0 = arith.constant 0 : i32
    %c0_i32_1 = arith.constant 0 : i32
    return %arg0, %c0_i32, %c0_i32_0 : i32, i32, i32
  }
  func.func @transform_9(%arg0: i32, %arg1: i32) -> (i32, i32, i32) {
    %c0_i32 = arith.constant 0 : i32
    %c0_i32_0 = arith.constant 0 : i32
    %c0_i32_1 = arith.constant 0 : i32
    return %arg0, %c0_i32, %c0_i32_0 : i32, i32, i32
  }
  func.func @transform_10(%arg0: i32, %arg1: i32) -> (i32, i32, i32) {
    %c0_i32 = arith.constant 0 : i32
    %c0_i32_0 = arith.constant 0 : i32
    %c0_i32_1 = arith.constant 0 : i32
    return %arg0, %c0_i32, %c0_i32_0 : i32, i32, i32
  }
  func.func @transform_11(%arg0: i32, %arg1: i32) -> (i32, i32, i32) {
    %c0_i32 = arith.constant 0 : i32
    %c0_i32_0 = arith.constant 0 : i32
    %c0_i32_1 = arith.constant 0 : i32
    return %arg0, %c0_i32, %c0_i32_0 : i32, i32, i32
  }
  func.func @transform_12(%arg0: i32, %arg1: i32) -> (i32, i32, i32) {
    %c0_i32 = arith.constant 0 : i32
    %c0_i32_0 = arith.constant 0 : i32
    %c0_i32_1 = arith.constant 0 : i32
    return %arg0, %c0_i32, %c0_i32_0 : i32, i32, i32
  }
  func.func @transform_13(%arg0: i32, %arg1: i32) -> (i32, i32) {
    %c0_i32 = arith.constant 0 : i32
    %c0_i32_0 = arith.constant 0 : i32
    %c0_i32_1 = arith.constant 0 : i32
    return %c0_i32, %c0_i32_0 : i32, i32
  }
}

</mosaic_0001>

<bundles_post_ra>
// kernel: tpu_custom_call.1
= control target key start
LH: loop header
LB: loop body
LE: loop exit
PB: predicated region body
PF: predicated region fallthrough
CT: control target
= control target key end

     0   :  { %s3372_s0 = inlined_call_operand.vmem [shape: bf16[128,128], index: 0, kind: input, shape index: {}]   ;;  %s3373_s1 = inlined_call_operand.vmem [shape: s32[128,1], index: 1, kind: input, shape index: {}]   ;;  %s3374_s2 = inlined_call_operand.hbm [shape: s32[1,128], index: 2, kind: input, shape index: {}]   ;;  %s3375_s3 = inlined_call_operand.vmem [shape: f32[128,1], index: 3, kind: input, shape index: {}]   ;;  %s3376_s4 = inlined_call_operand.vmem [shape: bf16[128,128], index: 4, kind: input, shape index: {}]   ;;  %s3377_s5 = inlined_call_operand.vmem [shape: f32[128,1], index: 5, kind: input, shape index: {}]   ;;  %s3378_s6 = inlined_call_operand.vmem [shape: bf16[2,128,128], index: 6, kind: input, shape index: {}]   ;;  %s3379_s7 = inlined_call_operand.vmem [shape: f32[2,1,128], index: 7, kind: input, shape index: {}]   ;;  %s3380_s8 = inlined_call_operand.vmem [shape: bf16[2,128,128], index: 8, kind: input, shape index: {}]   ;;  %s3381_s9 = inlined_call_operand.vmem [shape: f32[2,1,128], index: 9, kind: input, shape index: {}]   ;;  %s3382_s10 = inlined_call_operand.vmem [shape: f32[2,1,128], index: 10, kind: input, shape index: {}]   ;;  %s3383_s11 = inlined_call_operand.vmem [shape: f32[2,1,128], index: 11, kind: input, shape index: {}]   ;;  %s3384_s12 = inlined_call_operand.vmem [shape: f32[2,1,128], index: 12, kind: input, shape index: {}]   ;;  %s3385_s13 = inlined_call_operand.hbm [shape: f32[128,128], index: 13, kind: output, shape index: {}]  }
   0x1   :  { %3392 = sst [smem:[#allocation14_spill]] %s3374_s2 }
   0x2   :  { %3393 = sst [smem:[#allocation15_spill]] %s3378_s6 }
   0x3   :  { %3394 = sst [smem:[#allocation16_spill]] %s3385_s13 }
   0x4   :  { %18 = vsyncpa [#allocation7], 0 }
   0x5   :  { %19 = vsyncpa [#allocation8], 0  ;;  %s2741_s25 = smov 0   ;;  %s2743_s26 = smov 0  }
   0x6   :  { %s2745_s27 = smov 0  }
   0x7 LB: > { %3395 = sst [smem:[#allocation12_spill]] %s2659_s26  ;;  %s3389_s28 = sadd.s32 4294967295, %s2663_s27   ;;  %s2663_s27 = sphi %s2745_s27, %s25_s27   ;;  %s2659_s26 = sphi %s2743_s26, %s3423_s26   ;;  %s2655_s25 = sphi %s2741_s25, %s3422_s25  }
   0x8   : > { %s37_s29 = sadd.s32 1, %s2659_s26  ;;  %p2184_p1 = scmp.ge.s32.totalorder %s2663_s27, 1 }
   0x9   : > { %p39_p0 = scmp.ge.s32.totalorder %s37_s29, 2  ;;  %p391_p2 = scmp.lt.s32.totalorder %s2663_s27, 3 }
   0xa   : > { %p2768_p4 = scmp.eq.s32.totalorder %s3389_s28, 0  ;;  %s2665_s15 = smov [#allocation6]  }
   0xb   : > { %s3425_s29 = smov (%p39_p0, %s37_s29), 0  ;;  %p2762_p3 = pnand %p2184_p1, %p391_p2 }
   0xc   : > { %3396 = sst [smem:[#allocation13_spill]] %s3425_s29  ;;  %s418_s16 = sshll.u32 %s2665_s15, 4  ;;  %s419_s16 = int_to_ptr.vmem [resolvable:$true] %s418_s16 }
   0xd   : > { %s3397_s30 = scalar_select %p2762_p3, 1, 0 }
   0xe   : > { %s3398_s14 = scalar_select %p2768_p4, 1, 0 }
   0xf   : > { %p2507_p5 = pneg %p2762_p3  ;;  %s3400_s2 = sld [smem:[#allocation14_spill]] }
  0x11   : > { %p2776_p6 = pnand %p2768_p4, %p2507_p5 }
  0x13   : > { %p2581_p8 = pneg %p2776_p6 }
  0x15   : > { %s2579_s20 = scalar_lea.hbm %s3400_s2, 16 }
  0x16   : > { %p2580_p7 = scmp.ne.s32.totalorder %s3400_s2, %s2579_s20  ;;  %p2586_p11 = scmp.lt.u32.totalorder %s2579_s20, %s3400_s2 }
  0x18   : > { %p2582_p9 = pnand %p2581_p8, %p2580_p7 }
  0x1a   : > { %p2583_p10 = pneg %p2582_p9 }
  0x1c   : > { %p2588_p12 = pnand %p2586_p11, %p2583_p10 }
  0x1e   : > { %2591 = shalt.err (!%p2588_p12)
}
  0x1f   : > { %s2592_s15 = scalar_lea.vmem %s419_s16, 16  ;;  %s2599_s18 = scalar_lea.vmem %s419_s16, 32 }
  0x20   : > { %p2593_p13 = scmp.ne.s32.totalorder %s419_s16, %s2592_s15  ;;  %p2600_p2 = scmp.lt.s32.totalorder %s419_s16, %s419_s16 }
  0x21   : > { %p2601_p5 = scmp.lt.s32.totalorder %s2599_s18, %s2592_s15 }
  0x22   : > { %p2595_p0 = pnand %p2593_p13, %p2581_p8 }
  0x23   : > { %p2602_p4 = por %p2601_p5, %p2600_p2 }
  0x24   : > { %p2596_p1 = pneg %p2595_p0 }
  0x26   : > { %p2603_p3 = pnand %p2602_p4, %p2596_p1 }
  0x28   : > { %2606 = shalt.err (!%p2603_p3)
}
  0x29   : > { %2510 = dma.hbm_to_vmem [thread:$0]  (!%p2776_p6), %s3400_s2, 16, %s419_s16, [#allocation7]  }
  0x2a   : > { %p3401_p7 = scmp.ne.s32.totalorder %s3397_s30, 0 }
  0x2b   : > { %p3402_p9 = scmp.ne.s32.totalorder (!%p3401_p7), %s3398_s14, 0 }
  0x2c   : > { %498 = sbr.rel (%p3401_p7) target bundleno = 893 (0x37d), region = 72 }
  0x33   : > { %2646 = dma.done.wait (%p3402_p9), [#allocation7], 16  }
  0x34   : > { %2648 = vsyncadd (%p3402_p9), [#allocation7], 4294967280  ;;  %p590_p8 = scmp.lt.s32.totalorder %s2655_s25, 1  ;;  %s3403_s6 = sld [smem:[#allocation15_spill]] }
  0x35   : > { %p2196_p3 = scmp.ne.s32.totalorder %s2655_s25, 0 }
  0x36   : > { %s2804_s20 = scalar_select %p590_p8, %s2655_s25, 1 }
  0x37   : > { %623 = sbr.rel (%p2196_p3) target bundleno = 62 (0x3e), region = 84  ;;  %v2545_v0 = vld [vmem:[%s3372_s0] sm:$0xff] (!%p2196_p3)   ;;  %v2546_v1 = vld [vmem:[%s3372_s0 + $0x8] sm:$0xff] (!%p2196_p3)   ;;  %v2547_v2 = vld [vmem:[%s3372_s0 + $0x10] sm:$0xff] (!%p2196_p3)  }
  0x38   : > { %s2273_s16 = sshll.u32 %s2804_s20, 6  ;;  %s605_s2 = scalar_lea.vmem %s3381_s9, %s2804_s20  ;;  %688 = vst [vmem:[#allocation2] sm:$0xff] (!%p2196_p3), %v2545_v0  ;;  %689 = vst [vmem:[#allocation2 + $0x8] sm:$0xff] (!%p2196_p3), %v2546_v1  ;;  %v2548_v3 = vld [vmem:[%s3372_s0 + $0x18] sm:$0xff] (!%p2196_p3)   ;;  %v2549_v4 = vld [vmem:[%s3372_s0 + $0x20] sm:$0xff] (!%p2196_p3)  }
  0x39   : > { %s2819_s19 = scalar_lea.vmem %s3380_s8, %s2273_s16  ;;  %s608_s13 = scalar_lea.vmem %s3382_s10, %s2804_s20  ;;  %690 = vst [vmem:[#allocation2 + $0x10] sm:$0xff] (!%p2196_p3), %v2547_v2  ;;  %691 = vst [vmem:[#allocation2 + $0x18] sm:$0xff] (!%p2196_p3), %v2548_v3  ;;  %v2550_v5 = vld [vmem:[%s3372_s0 + $0x28] sm:$0xff] (!%p2196_p3)   ;;  %v2551_v6 = vld [vmem:[%s3372_s0 + $0x30] sm:$0xff] (!%p2196_p3)  }
  0x3a   : > { %s2814_s14 = scalar_lea.vmem %s3403_s6, %s2273_s16  ;;  %s611_s22 = scalar_lea.vmem %s3383_s11, %s2804_s20  ;;  %692 = vst [vmem:[#allocation2 + $0x20] sm:$0xff] (!%p2196_p3), %v2549_v4  ;;  %693 = vst [vmem:[#allocation2 + $0x28] sm:$0xff] (!%p2196_p3), %v2550_v5  ;;  %v2552_v7 = vld [vmem:[%s3372_s0 + $0x38] sm:$0xff] (!%p2196_p3)  }
  0x3b   : > { %s614_s6 = scalar_lea.vmem %s3384_s12, %s2804_s20  ;;  %694 = vst [vmem:[#allocation2 + $0x30] sm:$0xff] (!%p2196_p3), %v2551_v6  ;;  %695 = vst [vmem:[#allocation2 + $0x38] sm:$0xff] (!%p2196_p3), %v2552_v7 }
  0x3e PF: > { %v2555_v8 = vld [vmem:[%s2814_s14] sm:$0xff]   ;;  %v2556_v9 = vld [vmem:[%s2814_s14 + $0x8] sm:$0xff]   ;;  %v2666_v10 = vmov 0   ;;  %v2557_v11 = vld [vmem:[%s2814_s14 + $0x10] sm:$0xff]   ;;  %s3404_s16 = scalar_lea.vmem %s3379_s7, %s2804_s20  ;;  %p2267_p4 = scmp.eq.s32.totalorder %s2655_s25, 1 }
  0x3f   : > { %2553 = vset.pattern.permute.xlu0 %v2666_v10  ;;  %2554 = vset.pattern.permute.xlu1 %v2666_v10  ;;  %v2558_v12 = vld [vmem:[%s2814_s14 + $0x18] sm:$0xff]   ;;  %v696_v13 = vld [vmem:[#allocation2] sm:$0xff]  ;;  %v1156_v15 = vld [vmem:[%s3373_s1 + $0x10] sm:$0xff] }
  0x40   : > { %2339 = vmatprep.subr.bf16.mxu0 %v2555_v8  ;;  %2355 = vmatprep.mubr.bf16.mxu0 %v696_v13  ;;  %v1154_v14 = vld [vmem:[%s3373_s1] sm:$0xff]  ;;  %v1155_v17 = vld [vmem:[%s3373_s1 + $0x8] sm:$0xff]  ;;  %v1157_v18 = vld [vmem:[%s3373_s1 + $0x18] sm:$0xff] }
  0x41   : > { %2340 = vmatpush3.bf16.msra.mxu0 %v2555_v8  ;;  %1171 = vperm.xlu0 %2553, %v1154_v14   ;;  %v2559_v16 = vld [vmem:[%s2814_s14 + $0x20] sm:$0xff]   ;;  %v2560_v19 = vld [vmem:[%s2814_s14 + $0x28] sm:$0xff]   ;;  %v2561_v22 = vld [vmem:[%s2814_s14 + $0x30] sm:$0xff]  }
  0x42   : > { %2341 = vmatprep.subr.bf16.mxu0 %v2556_v9  ;;  %1177 = vperm.xlu1 %2554, %v1156_v15   ;;  %v1158_v20 = vld [vmem:[%s3373_s1 + $0x20] sm:$0xff]  ;;  %v1159_v21 = vld [vmem:[%s3373_s1 + $0x28] sm:$0xff]  ;;  %v1160_v23 = vld [vmem:[%s3373_s1 + $0x30] sm:$0xff] }
  0x43   : > { %v1161_v24 = vld [vmem:[%s3373_s1 + $0x38] sm:$0xff]  ;;  %v1162_v26 = vld [vmem:[%s3373_s1 + $0x40] sm:$0xff]  ;;  %v1163_v27 = vld [vmem:[%s3373_s1 + $0x48] sm:$0xff] }
  0x44   : > { %v2562_v25 = vld [vmem:[%s2814_s14 + $0x38] sm:$0xff]   ;;  %v1164_v28 = vld [vmem:[%s3373_s1 + $0x50] sm:$0xff]  ;;  %v697_v30 = vld [vmem:[#allocation2 + $0x8] sm:$0xff] }
  0x45   : > { %2342 = vmatpush3.bf16.msra.mxu0 %v2556_v9  ;;  %1174 = vperm.xlu0 %2553, %v1155_v17   ;;  %v1165_v29 = vld [vmem:[%s3373_s1 + $0x58] sm:$0xff]  ;;  %v698_v31 = vld [vmem:[#allocation2 + $0x10] sm:$0xff]  ;;  %v1166_v32 = vld [vmem:[%s3373_s1 + $0x60] sm:$0xff] }
  0x46   : > { %2343 = vmatprep.subr.bf16.mxu0 %v2557_v11  ;;  %1180 = vperm.xlu1 %2554, %v1157_v18   ;;  %v1167_v33 = vld [vmem:[%s3373_s1 + $0x68] sm:$0xff]  ;;  %v1168_v34 = vld [vmem:[%s3373_s1 + $0x70] sm:$0xff]  ;;  %v1169_v35 = vld [vmem:[%s3373_s1 + $0x78] sm:$0xff] }
  0x47   : > { %v699_v36 = vld [vmem:[#allocation2 + $0x18] sm:$0xff]  ;;  %v700_v37 = vld [vmem:[#allocation2 + $0x20] sm:$0xff]  ;;  %v1267_v39 = vld [vmem:[%s3375_s3 + $0x8] sm:$0xff] }
  0x48   : > { %v1266_v38 = vld [vmem:[%s3375_s3] sm:$0xff]  ;;  %v1268_v40 = vld [vmem:[%s3375_s3 + $0x10] sm:$0xff]  ;;  %v1269_v41 = vld [vmem:[%s3375_s3 + $0x18] sm:$0xff] }
  0x49   : > { %2344 = vmatpush3.bf16.msra.mxu0 %v2557_v11  ;;  %1183 = vperm.xlu0 %2553, %v1158_v20   ;;  %v701_v42 = vld [vmem:[#allocation2 + $0x28] sm:$0xff]  ;;  %v2563_v43 = vld [vmem:[%s2819_s19] sm:$0xff]   ;;  %v702_v44 = vld [vmem:[#allocation2 + $0x30] sm:$0xff] }
  0x4a   : > { %2345 = vmatprep.subr.bf16.mxu0 %v2558_v12  ;;  %1186 = vperm.xlu1 %2554, %v1159_v21   ;;  %v1270_v45 = vld [vmem:[%s3375_s3 + $0x20] sm:$0xff]  ;;  %v1271_v46 = vld [vmem:[%s3375_s3 + $0x28] sm:$0xff]  ;;  %v1272_v48 = vld [vmem:[%s3375_s3 + $0x30] sm:$0xff]  ;;  %v1152_v21 = vlaneseq }
  0x4b   : > { %2371 = vmatprep.subr.bf16.mxu1 %v2563_v43  ;;  %v2564_v47 = vld [vmem:[%s2819_s19 + $0x8] sm:$0xff]   ;;  %v1273_v49 = vld [vmem:[%s3375_s3 + $0x38] sm:$0xff]  ;;  %v2565_v51 = vld [vmem:[%s2819_s19 + $0x10] sm:$0xff]  }
  0x4c   : > { %2372 = vmatpush3.bf16.msra.mxu1 %v2563_v43  ;;  %v703_v50 = vld [vmem:[#allocation2 + $0x38] sm:$0xff]  ;;  %v1274_v52 = vld [vmem:[%s3375_s3 + $0x40] sm:$0xff]  ;;  %v1275_v53 = vld [vmem:[%s3375_s3 + $0x48] sm:$0xff] }
  0x4d   : > { %2346 = vmatpush3.bf16.msra.mxu0 %v2558_v12  ;;  %1189 = vperm.xlu0 %2553, %v1160_v23   ;;  %v2566_v54 = vld [vmem:[%s2819_s19 + $0x18] sm:$0xff]   ;;  %v1276_v55 = vld [vmem:[%s3375_s3 + $0x50] sm:$0xff]  ;;  %v2567_v57 = vld [vmem:[%s2819_s19 + $0x20] sm:$0xff]  }
  0x4e   : > { %2347 = vmatprep.subr.bf16.mxu0 %v2559_v16  ;;  %1192 = vperm.xlu1 %2554, %v1161_v24   ;;  %v1277_v56 = vld [vmem:[%s3375_s3 + $0x58] sm:$0xff]  ;;  %v1278_v58 = vld [vmem:[%s3375_s3 + $0x60] sm:$0xff]  ;;  %v1279_v59 = vld [vmem:[%s3375_s3 + $0x68] sm:$0xff] }
  0x4f   : > { %2373 = vmatprep.subr.bf16.mxu1 %v2564_v47  ;;  %v2568_v60 = vld [vmem:[%s2819_s19 + $0x28] sm:$0xff]   ;;  %v1280_v61 = vld [vmem:[%s3375_s3 + $0x70] sm:$0xff]  ;;  %v1281_v62 = vld [vmem:[%s3375_s3 + $0x78] sm:$0xff] }
  0x50   : > { %2374 = vmatpush3.bf16.msra.mxu1 %v2564_v47  ;;  %v1780_v63 = vld [vmem:[%s3377_s5] sm:$0xff]  ;;  %v1781_v0 = vld [vmem:[%s3377_s5 + $0x8] sm:$0xff]  ;;  %v1782_v1 = vld [vmem:[%s3377_s5 + $0x10] sm:$0xff] }
  0x51   : > { %2348 = vmatpush3.bf16.msra.mxu0 %v2559_v16  ;;  %1195 = vperm.xlu0 %2553, %v1162_v26   ;;  %v1783_v2 = vld [vmem:[%s3377_s5 + $0x18] sm:$0xff]  ;;  %v1784_v3 = vld [vmem:[%s3377_s5 + $0x20] sm:$0xff]  ;;  %v1785_v4 = vld [vmem:[%s3377_s5 + $0x28] sm:$0xff] }
  0x52   : > { %2349 = vmatprep.subr.bf16.mxu0 %v2560_v19  ;;  %1198 = vperm.xlu1 %2554, %v1163_v27   ;;  %v1786_v5 = vld [vmem:[%s3377_s5 + $0x30] sm:$0xff]  ;;  %v1787_v6 = vld [vmem:[%s3377_s5 + $0x38] sm:$0xff]  ;;  %v1788_v7 = vld [vmem:[%s3377_s5 + $0x40] sm:$0xff] }
  0x53   : > { %2375 = vmatprep.subr.bf16.mxu1 %v2565_v51  ;;  %v1789_v8 = vld [vmem:[%s3377_s5 + $0x48] sm:$0xff]  ;;  %v1790_v9 = vld [vmem:[%s3377_s5 + $0x50] sm:$0xff]  ;;  %v1791_v10 = vld [vmem:[%s3377_s5 + $0x58] sm:$0xff] }
  0x54   : > { %2376 = vmatpush3.bf16.msra.mxu1 %v2565_v51  ;;  %v1792_v11 = vld [vmem:[%s3377_s5 + $0x60] sm:$0xff]  ;;  %v1793_v12 = vld [vmem:[%s3377_s5 + $0x68] sm:$0xff]  ;;  %v1794_v13 = vld [vmem:[%s3377_s5 + $0x70] sm:$0xff] }
  0x55   : > { %2350 = vmatpush3.bf16.msra.mxu0 %v2560_v19  ;;  %1201 = vperm.xlu0 %2553, %v1164_v28   ;;  %v1795_v14 = vld [vmem:[%s3377_s5 + $0x78] sm:$0xff]  ;;  %v2569_v15 = vld [vmem:[%s2819_s19 + $0x30] sm:$0xff]   ;;  %v2571_v17 = vld [vmem:[%s3376_s4] sm:$0xff]  }
  0x56   : > { %2351 = vmatprep.subr.bf16.mxu0 %v2561_v22  ;;  %1204 = vperm.xlu1 %2554, %v1165_v29   ;;  %v2570_v16 = vld [vmem:[%s2819_s19 + $0x38] sm:$0xff]   ;;  %v2572_v18 = vld [vmem:[%s3376_s4 + $0x8] sm:$0xff]   ;;  %v2573_v19 = vld [vmem:[%s3376_s4 + $0x10] sm:$0xff]   ;;  %v2667_v29 = vmov 1.0|1.0  }
  0x57   : > { %2377 = vmatprep.subr.bf16.mxu1 %v2566_v54  ;;  %2387 = vmatprep.mubr.bf16.mxu1 %v2571_v17  ;;  %v2574_v20 = vld [vmem:[%s3376_s4 + $0x18] sm:$0xff]   ;;  %v2576_v24 = vld [vmem:[%s3376_s4 + $0x28] sm:$0xff]   ;;  %v2577_v27 = vld [vmem:[%s3376_s4 + $0x30] sm:$0xff]  }
  0x58   : > { %2378 = vmatpush3.bf16.msra.mxu1 %v2566_v54  ;;  %v2578_v28 = vld [vmem:[%s3376_s4 + $0x38] sm:$0xff]  }
  0x59   : > { %2352 = vmatpush3.bf16.msra.mxu0 %v2561_v22  ;;  %1207 = vperm.xlu0 %2553, %v1166_v32   ;;  %v2575_v22 = vld [vmem:[%s3376_s4 + $0x20] sm:$0xff]  }
  0x5a   : > { %2353 = vmatprep.subr.bf16.mxu0 %v2562_v25  ;;  %1210 = vperm.xlu1 %2554, %v1167_v33  }
  0x5b   : > { %2379 = vmatprep.subr.bf16.mxu1 %v2567_v57 }
  0x5c   : > { %2380 = vmatpush3.bf16.msra.mxu1 %v2567_v57 }
  0x5d   : > { %2354 = vmatpush3.bf16.msra.mxu0 %v2562_v25  ;;  %1213 = vperm.xlu0 %2553, %v1168_v34   ;;  %v3041_v25 = vand.u32 127, %v1152_v21 }
  0x5e   : > { %1216 = vperm.xlu1 %2554, %v1169_v35   ;;  %2381 = vmatprep.subr.bf16.mxu1 %v2568_v60 }
  0x60   : > { %2356 = vmatmul.mubr.bf16.vlgmr.msra.gmra.mrb[0].mxu0 %v697_v30  ;;  %2382 = vmatpush3.bf16.msra.mxu1 %v2568_v60 }
  0x61   : > { %2359 = vmatprep.mubr.bf16.mxu0 %v698_v31  ;;  %1397 = vperm.xlu0 %2553, %v1266_v38   ;;  %v2205_v31 = vld [vmem:[%s3404_s16] ss:$0 sm:$0xff] }
  0x62   : > { %1402 = vperm.xlu1 %2554, %v1267_v39   ;;  %2383 = vmatprep.subr.bf16.mxu1 %v2569_v15 }
  0x64   : > { %2384 = vmatpush3.bf16.msra.mxu1 %v2569_v15 }
  0x65   : > { %1407 = vperm.xlu0 %2553, %v1268_v40   ;;  %2385 = vmatprep.subr.bf16.mxu1 %v2570_v16 }
  0x66   : > { %1412 = vperm.xlu1 %2554, %v1269_v41  }
  0x68   : > { %2360 = vmatmul.mubr.bf16.gmra.mrb[4].mxu0 %v699_v36  ;;  %2386 = vmatpush3.bf16.msra.mxu1 %v2570_v16 }
  0x69   : > { %2363 = vmatprep.mubr.bf16.mxu0 %v700_v37  ;;  %1417 = vperm.xlu0 %2553, %v1270_v45  }
  0x6a   : > { %1422 = vperm.xlu1 %2554, %v1271_v46  }
  0x6b   : > { %2388 = vmatmul.mubr.bf16.vlgmr.msra.gmra.mrb[0].mxu1 %v2572_v18 }
  0x6c   : > { %2391 = vmatprep.mubr.bf16.mxu1 %v2573_v19 }
  0x6d   : > { %1427 = vperm.xlu0 %2553, %v1272_v48  }
  0x6e   : > { %1432 = vperm.xlu1 %2554, %v1273_v49  }
  0x70   : > { %2364 = vmatmul.mubr.bf16.gmra.mrb[8].mxu0 %v701_v42 }
  0x71   : > { %2367 = vmatprep.mubr.bf16.mxu0 %v702_v44  ;;  %1437 = vperm.xlu0 %2553, %v1274_v52  }
  0x72   : > { %1442 = vperm.xlu1 %2554, %v1275_v53  }
  0x73   : > { %2392 = vmatmul.mubr.bf16.gmra.mrb[4].mxu1 %v2574_v20 }
  0x74   : > { %2395 = vmatprep.mubr.bf16.mxu1 %v2575_v22  ;;  %v1492_v22 = vshrl.u32 %v1152_v21, 7 }
  0x75   : > { %1447 = vperm.xlu0 %2553, %v1276_v55  }
  0x76   : > { %1452 = vperm.xlu1 %2554, %v1277_v56  }
  0x78   : > { %2368 = vmatmul.mubr.bf16.gmra.mrb[12].mxu0 %v703_v50 }
  0x79   : > { %1457 = vperm.xlu0 %2553, %v1278_v58  }
  0x7a   : > { %1462 = vperm.xlu1 %2554, %v1279_v59  }
  0x7b   : > { %2396 = vmatmul.mubr.bf16.gmra.mrb[8].mxu1 %v2576_v24  ;;  %v2247_v24 = vld [vmem:[#allocation6] ss:$0 sm:$0xff] }
  0x7c   : > { %2399 = vmatprep.mubr.bf16.mxu1 %v2577_v27  ;;  %v1495_v27 = vadd.s32 24, %v1492_v22 }
  0x7d   : > { %1467 = vperm.xlu0 %2553, %v1280_v61  }
  0x7e   : > { %1472 = vperm.xlu1 %2554, %v1281_v62  }
  0x81   : > { %1798 = vperm.xlu0 %2553, %v1780_v63  }
  0x82   : > { %1803 = vperm.xlu1 %2554, %v1781_v0  }
  0x83   : > { %2400 = vmatmul.mubr.bf16.gmra.mrb[12].mxu1 %v2578_v28 }
  0x85   : > { %1808 = vperm.xlu0 %2553, %v1782_v1  }
  0x86   : > { %1813 = vperm.xlu1 %2554, %v1783_v2  }
  0x89   : > { %1818 = vperm.xlu0 %2553, %v1784_v3  }
  0x8a   : > { %1823 = vperm.xlu1 %2554, %v1785_v4  }
  0x8d   : > { %1828 = vperm.xlu0 %2553, %v1786_v5  }
  0x8e   : > { %1833 = vperm.xlu1 %2554, %v1787_v6  }
  0x91   : > { %1838 = vperm.xlu0 %2553, %v1788_v7  }
  0x92   : > { %1843 = vperm.xlu1 %2554, %v1789_v8  }
  0x95   : > { %1848 = vperm.xlu0 %2553, %v1790_v9  }
  0x96   : > { %1853 = vperm.xlu1 %2554, %v1791_v10  }
  0x99   : > { %1858 = vperm.xlu0 %2553, %v1792_v11  }
  0x9a   : > { %1863 = vperm.xlu1 %2554, %v1793_v12  }
  0x9d   : > { %1868 = vperm.xlu0 %2553, %v1794_v13  }
  0x9e   : > { %1873 = vperm.xlu1 %2554, %v1795_v14  }
  0xc0   : > { %v1172_v23 = vpop.permute.xlu0 %1171 }
  0xc1   : > { %vm1218_vm0 = vcmp.eq.s32.totalorder %v1172_v23, %v3041_v25  ;;  %v1178_v51 = vpop.permute.xlu1 %1177  ;;  %v1493_v23 = vadd.s32 8, %v1492_v22 }
  0xc2   : > { %vm1220_vm3 = vcmp.eq.s32.totalorder %v1178_v51, %v3041_v25  ;;  %v1507_v51 = vadd.s32 120, %v1492_v22 }
  0xc4   : > { %v1175_v26 = vpop.permute.xlu0 %1174 }
  0xc5   : > { %vm1219_vm1 = vcmp.eq.s32.totalorder %v1175_v26, %v3041_v25  ;;  %v1181_v61 = vpop.permute.xlu1 %1180  ;;  %v1494_v26 = vadd.s32 16, %v1492_v22 }
  0xc6   : > { %vm2231_vm2 = vmpackc.low %vm1219_vm1, %vm1218_vm0  ;;  %vm1221_vm4 = vcmp.eq.s32.totalorder %v1181_v61, %v3041_v25 }
  0xc7   : > { %2419 = vmatprep.mubr.msk.bf16.mxu1 %vm2231_vm2, %v2667_v29  ;;  %vm2233_vm7 = vmpackc.low %vm1221_vm4, %vm1220_vm3 }
  0xc8   : > { %v1184_v5 = vpop.permute.xlu0 %1183 }
  0xc9   : > { %v1187_v6 = vpop.permute.xlu1 %1186  ;;  %vm1222_vm5 = vcmp.eq.s32.totalorder %v1184_v5, %v3041_v25 }
  0xca   : > { %vm1223_vm6 = vcmp.eq.s32.totalorder %v1187_v6, %v3041_v25 }
  0xcb   : > { %vm2235_vm8 = vmpackc.low %vm1223_vm6, %vm1222_vm5 }
  0xcc   : > { %v1190_v11 = vpop.permute.xlu0 %1189 }
  0xcd   : > { %v1193_v12 = vpop.permute.xlu1 %1192  ;;  %vm1224_vm9 = vcmp.eq.s32.totalorder %v1190_v11, %v3041_v25 }
  0xce   : > { %vm1225_vm10 = vcmp.eq.s32.totalorder %v1193_v12, %v3041_v25 }
  0xcf   : > { %vm2237_vm13 = vmpackc.low %vm1225_vm10, %vm1224_vm9  ;;  %vm1514_vm9 = vcmp.eq.s32.totalorder %v2247_v24, %v1493_v23 }
  0xd0   : > { %v1196_v13 = vpop.permute.xlu0 %1195 }
  0xd1   : > { %v1199_v14 = vpop.permute.xlu1 %1198  ;;  %vm1226_vm11 = vcmp.eq.s32.totalorder %v1196_v13, %v3041_v25 }
  0xd2   : > { %vm1227_vm12 = vcmp.eq.s32.totalorder %v1199_v14, %v3041_v25 }
  0xd3   : > { %vm2239_vm14 = vmpackc.low %vm1227_vm12, %vm1226_vm11  ;;  %vm1515_vm11 = vcmp.eq.s32.totalorder %v2247_v24, %v1494_v26  ;;  %vm1516_vm12 = vcmp.eq.s32.totalorder %v2247_v24, %v1495_v27 }
  0xd4   : > { %v1202_v15 = vpop.permute.xlu0 %1201 }
  0xd5   : > { %v1205_v16 = vpop.permute.xlu1 %1204  ;;  %vm1228_vm15 = vcmp.eq.s32.totalorder %v1202_v15, %v3041_v25 }
  0xd6   : > { %vm1229_vm0 = vcmp.eq.s32.totalorder %v1205_v16, %v3041_v25 }
  0xd7   : > { %vm2241_vm3 = vmpackc.low %vm1229_vm0, %vm1228_vm15 }
  0xd8   : > { %v1208_v17 = vpop.permute.xlu0 %1207 }
  0xd9   : > { %v1211_v18 = vpop.permute.xlu1 %1210  ;;  %vm1230_vm1 = vcmp.eq.s32.totalorder %v1208_v17, %v3041_v25 }
  0xda   : > { %vm1231_vm2 = vcmp.eq.s32.totalorder %v1211_v18, %v3041_v25 }
  0xdb   : > { %vm2243_vm4 = vmpackc.low %vm1231_vm2, %vm1230_vm1 }
  0xdc   : > { %v1214_v19 = vpop.permute.xlu0 %1213 }
  0xdd   : > { %v1217_v20 = vpop.permute.xlu1 %1216  ;;  %vm1232_vm5 = vcmp.eq.s32.totalorder %v1214_v19, %v3041_v25 }
  0xde   : > { %vm1233_vm6 = vcmp.eq.s32.totalorder %v1217_v20, %v3041_v25  ;;  %v1496_v25 = vadd.s32 32, %v1492_v22 }
 0x133   : > { %v2357_v30 = vpop.f32.mrb[0].mxu0 }
 0x134   : > { %v809_v32 = vpop.f32.mrb[1].mxu0  ;;  %v3057_v34 = vadd.f32 %v2357_v30, %v2205_v31  ;;  %v1497_v30 = vadd.s32 40, %v1492_v22 }
 0x135   : > { %v2358_v33 = vpop.f32.mrb[2].mxu0  ;;  %v3061_v37 = vadd.f32 %v2205_v31, %v809_v32  ;;  %v1499_v32 = vadd.s32 56, %v1492_v22 }
 0x136   : > { %v3059_v35 = vadd.f32 %v2358_v33, %v2205_v31  ;;  %v812_v36 = vpop.f32.mrb[3].mxu0  ;;  %vm1518_vm15 = vcmp.eq.s32.totalorder %v2247_v24, %v1497_v30 }
 0x137   : > { %v3063_v38 = vadd.f32 %v2205_v31, %v812_v36  ;;  %vm1520_vm2 = vcmp.eq.s32.totalorder %v2247_v24, %v1499_v32  ;;  %v1500_v36 = vadd.s32 64, %v1492_v22 }
 0x138   : > { %v889_v39 = vpack.c.bf16 %v3059_v35, %v3057_v34 }
 0x139   : > { %v888_v40 = vpack.c.bf16 %v3063_v38, %v3061_v37 }
 0x13b   : > { %v2361_v41 = vpop.f32.mrb[4].mxu0  ;;  %2403 = vmatprep.subr.bf16.mxu1 %v888_v40 }
 0x13c   : > { %v825_v42 = vpop.f32.mrb[5].mxu0  ;;  %2404 = vmatpush3.bf16.msra.mxu1 %v888_v40  ;;  %v3069_v44 = vadd.f32 %v2361_v41, %v2205_v31  ;;  %v1502_v40 = vadd.s32 80, %v1492_v22  ;;  %v1503_v41 = vadd.s32 88, %v1492_v22 }
 0x13d   : > { %v2362_v43 = vpop.f32.mrb[6].mxu0  ;;  %2405 = vmatprep.subr.bf16.mxu1 %v889_v39  ;;  %v3073_v47 = vadd.f32 %v2205_v31, %v825_v42  ;;  %v3205_v42 = vld [vmem:[%s608_s13] ss:$0 sm:$0xff] }
 0x13e   : > { %v3071_v45 = vadd.f32 %v2362_v43, %v2205_v31  ;;  %v828_v46 = vpop.f32.mrb[7].mxu0 }
 0x13f   : > { %v3075_v48 = vadd.f32 %v2205_v31, %v828_v46  ;;  %v1504_v46 = vadd.s32 96, %v1492_v22 }
 0x140   : > { %v891_v49 = vpack.c.bf16 %v3071_v45, %v3069_v44  ;;  %2406 = vmatpush3.bf16.msra.mxu1 %v889_v39  ;;  %v1501_v39 = vadd.s32 72, %v1492_v22 }
 0x141   : > { %v890_v50 = vpack.c.bf16 %v3075_v48, %v3073_v47 }
 0x143   : > { %v2365_v52 = vpop.f32.mrb[8].mxu0  ;;  %2407 = vmatprep.subr.bf16.mxu1 %v890_v50 }
 0x144   : > { %v841_v53 = vpop.f32.mrb[9].mxu0  ;;  %2408 = vmatpush3.bf16.msra.mxu1 %v890_v50  ;;  %v3081_v55 = vadd.f32 %v2365_v52, %v2205_v31  ;;  %v1506_v50 = vadd.s32 112, %v1492_v22  ;;  %v1748_v52 = vadd.f32 %v3205_v42, %v3061_v37  ;;  %v1752_v37 = vadd.f32 %v3205_v42, %v3073_v47  ;;  %v3235_v47 = vld [vmem:[%s614_s6] ss:$0 sm:$0xff] }
 0x145   : > { %v2366_v54 = vpop.f32.mrb[10].mxu0  ;;  %2409 = vmatprep.subr.bf16.mxu1 %v891_v49  ;;  %v3085_v58 = vadd.f32 %v2205_v31, %v841_v53 }
 0x146   : > { %v3083_v56 = vadd.f32 %v2366_v54, %v2205_v31  ;;  %v844_v57 = vpop.f32.mrb[11].mxu0  ;;  %v1398_v54 = vpop.permute.xlu0 %1397 }
 0x147   : > { %v3087_v59 = vadd.f32 %v2205_v31, %v844_v57  ;;  %v1403_v57 = vpop.permute.xlu1 %1402 }
 0x148   : > { %v893_v60 = vpack.c.bf16 %v3083_v56, %v3081_v55  ;;  %2410 = vmatpush3.bf16.msra.mxu1 %v891_v49  ;;  %v1505_v49 = vadd.s32 104, %v1492_v22 }
 0x149   : > { %v892_v62 = vpack.c.bf16 %v3087_v59, %v3085_v58 }
 0x14b   : > { %v2369_v63 = vpop.f32.mrb[12].mxu0  ;;  %2411 = vmatprep.subr.bf16.mxu1 %v892_v62  ;;  %v1413_v61 = vpop.permute.xlu1 %1412 }
 0x14c   : > { %v857_v0 = vpop.f32.mrb[13].mxu0  ;;  %2412 = vmatpush3.bf16.msra.mxu1 %v892_v62  ;;  %v3093_v2 = vadd.f32 %v2369_v63, %v2205_v31  ;;  %v3161_v62 = vld [vmem:[%s605_s2] ss:$0 sm:$0xff] }
 0x14d   : > { %v2370_v1 = vpop.f32.mrb[14].mxu0  ;;  %2413 = vmatprep.subr.bf16.mxu1 %v893_v60  ;;  %v3097_v7 = vadd.f32 %v2205_v31, %v857_v0 }
 0x14e   : > { %v3095_v3 = vadd.f32 %v2370_v1, %v2205_v31  ;;  %v860_v4 = vpop.f32.mrb[15].mxu0 }
 0x14f   : > { %v3099_v8 = vadd.f32 %v2205_v31, %v860_v4  ;;  %v1498_v31 = vadd.s32 48, %v1492_v22  ;;  %v1423_v0 = vpop.permute.xlu1 %1422 }
 0x150   : > { %v895_v9 = vpack.c.bf16 %v3095_v3, %v3093_v2  ;;  %2414 = vmatpush3.bf16.msra.mxu1 %v893_v60  ;;  %v1408_v60 = vpop.permute.xlu0 %1407 }
 0x151   : > { %v894_v10 = vpack.c.bf16 %v3099_v8, %v3097_v7  ;;  %vm1519_vm1 = vcmp.eq.s32.totalorder %v2247_v24, %v1498_v31 }
 0x153   : > { %2415 = vmatprep.subr.bf16.mxu1 %v894_v10  ;;  %v1433_v17 = vpop.permute.xlu1 %1432 }
 0x154   : > { %2416 = vmatpush3.bf16.msra.mxu1 %v894_v10  ;;  %v1418_v63 = vpop.permute.xlu0 %1417 }
 0x155   : > { %2417 = vmatprep.subr.bf16.mxu1 %v895_v9 }
 0x158   : > { %2418 = vmatpush3.bf16.msra.mxu1 %v895_v9  ;;  %v1428_v15 = vpop.permute.xlu0 %1427 }
 0x15b   : > { %2420 = vmatmul.mubr.msk.bf16.vlgmr.msra.gmra.mrb[0].mxu1 %vm2233_vm7, %v2667_v29  ;;  %vm2245_vm7 = vmpackc.low %vm1233_vm6, %vm1232_vm5  ;;  %vm1522_vm5 = vcmp.eq.s32.totalorder %v2247_v24, %v1501_v39 }
 0x15c   : > { %2423 = vmatprep.mubr.msk.bf16.mxu1 %vm2235_vm8, %v2667_v29  ;;  %vm1513_vm8 = vcmp.eq.s32.totalorder %v2247_v24, %v1492_v22 }
 0x15d   : > { %vm2248_vm10 = vmpackc.low %vm1514_vm9, %vm1513_vm8  ;;  %vm1524_vm8 = vcmp.eq.s32.totalorder %v2247_v24, %v1503_v41 }
 0x15e   : > { %2451 = vmatprep.mubr.msk.bf16.mxu0 %vm2248_vm10, %v2667_v29  ;;  %vm1525_vm10 = vcmp.eq.s32.totalorder %v2247_v24, %v1504_v46  ;;  %v1443_v46 = vpop.permute.xlu1 %1442 }
 0x163   : > { %2424 = vmatmul.mubr.msk.bf16.gmra.mrb[4].mxu1 %vm2237_vm13, %v2667_v29  ;;  %vm3128_vm13 = vmpackc.low %vm1516_vm12, %vm1515_vm11  ;;  %vm1526_vm11 = vcmp.eq.s32.totalorder %v2247_v24, %v1505_v49 }
 0x164   : > { %2427 = vmatprep.mubr.msk.bf16.mxu1 %vm2239_vm14, %v2667_v29  ;;  %vm1517_vm14 = vcmp.eq.s32.totalorder %v2247_v24, %v1496_v25  ;;  %vm3148_vm12 = vmpackc.low %vm1526_vm11, %vm1525_vm10 }
 0x165   : > { %vm3132_vm0 = vmpackc.low %vm1518_vm15, %vm1517_vm14  ;;  %vm1527_vm14 = vcmp.eq.s32.totalorder %v2247_v24, %v1506_v50  ;;  %vm1528_vm15 = vcmp.eq.s32.totalorder %v2247_v24, %v1507_v51 }
 0x16b   : > { %2428 = vmatmul.mubr.msk.bf16.gmra.mrb[8].mxu1 %vm2241_vm3, %v2667_v29  ;;  %vm3136_vm3 = vmpackc.low %vm1520_vm2, %vm1519_vm1 }
 0x16c   : > { %2431 = vmatprep.mubr.msk.bf16.mxu1 %vm2243_vm4, %v2667_v29  ;;  %vm1521_vm4 = vcmp.eq.s32.totalorder %v2247_v24, %v1500_v36  ;;  %vm3152_vm1 = vmpackc.low %vm1528_vm15, %vm1527_vm14  ;;  %v1438_v36 = vpop.permute.xlu0 %1437 }
 0x16d   : > { %vm3140_vm6 = vmpackc.low %vm1522_vm5, %vm1521_vm4 }
 0x173   : > { %2432 = vmatmul.mubr.msk.bf16.gmra.mrb[12].mxu1 %vm2245_vm7, %v2667_v29  ;;  %vm1523_vm7 = vcmp.eq.s32.totalorder %v2247_v24, %v1502_v40 }
 0x174   : > { %vm3144_vm9 = vmpackc.low %vm1524_vm8, %vm1523_vm7 }
 0x22e   : > { %v2421_v1 = vpop.f32.mrb[0].mxu1 }
 0x22f   : > { %v2467_v4 = vadd.f32 %v2421_v1, %v3161_v62  ;;  %v1316_v5 = vpop.f32.mrb[1].mxu1 }
 0x230   : > { %v2468_v6 = vadd.f32 %v3161_v62, %v1316_v5  ;;  %v2422_v9 = vpop.f32.mrb[2].mxu1  ;;  %v1448_v5 = vpop.permute.xlu0 %1447 }
 0x231   : > { %v1381_v10 = vmax.f32 %v2467_v4, 0.0  ;;  %v2469_v11 = vadd.f32 %v2422_v9, %v3161_v62  ;;  %v1319_v12 = vpop.f32.mrb[3].mxu1 }
 0x232   : > { %v1379_v13 = vmax.f32 %v2468_v6, 0.0  ;;  %v2470_v14 = vadd.f32 %v3161_v62, %v1319_v12 }
 0x233   : > { %v1382_v16 = vmax.f32 %v2469_v11, 0.0  ;;  %v1477_v19 = vmul.f32 %v1408_v60, %v1381_v10  ;;  %v1453_v11 = vpop.permute.xlu1 %1452 }
 0x234   : > { %v1380_v18 = vmax.f32 %v2470_v14, 0.0  ;;  %v1475_v22 = vmul.f32 %v1398_v54, %v1379_v13 }
 0x235   : > { %v1478_v20 = vmul.f32 %v1413_v61, %v1382_v16 }
 0x236   : > { %v1476_v23 = vmul.f32 %v1403_v57, %v1380_v18  ;;  %v2425_v24 = vpop.f32.mrb[4].mxu1 }
 0x237   : > { %v2471_v26 = vadd.f32 %v2425_v24, %v3161_v62  ;;  %v1332_v27 = vpop.f32.mrb[5].mxu1  ;;  %v1570_v25 = vpack.c.bf16 %v1478_v20, %v1477_v19  ;;  %v1458_v20 = vpop.permute.xlu0 %1457 }
 0x238   : > { %v2472_v30 = vadd.f32 %v3161_v62, %v1332_v27  ;;  %v2426_v31 = vpop.f32.mrb[6].mxu1  ;;  %v1569_v32 = vpack.c.bf16 %v1476_v23, %v1475_v22  ;;  %v1463_v24 = vpop.permute.xlu1 %1462 }
 0x239   : > { %v1385_v39 = vmax.f32 %v2471_v26, 0.0  ;;  %v2473_v40 = vadd.f32 %v2426_v31, %v3161_v62  ;;  %v1335_v41 = vpop.f32.mrb[7].mxu1 }
 0x23a   : > { %v1383_v49 = vmax.f32 %v2472_v30, 0.0  ;;  %v2474_v50 = vadd.f32 %v3161_v62, %v1335_v41  ;;  %2435 = vmatprep.subr.bf16.mxu0 %v1569_v32 }
 0x23b   : > { %v1386_v51 = vmax.f32 %v2473_v40, 0.0  ;;  %2436 = vmatpush3.bf16.msra.mxu0 %v1569_v32  ;;  %v1481_v57 = vmul.f32 %v1428_v15, %v1385_v39 }
 0x23c   : > { %v1384_v54 = vmax.f32 %v2474_v50, 0.0  ;;  %2437 = vmatprep.subr.bf16.mxu0 %v1570_v25  ;;  %v1479_v61 = vmul.f32 %v1418_v63, %v1383_v49 }
 0x23d   : > { %v1482_v60 = vmul.f32 %v1433_v17, %v1386_v51 }
 0x23e   : > { %v1480_v1 = vmul.f32 %v1423_v0, %v1384_v54  ;;  %v2429_v4 = vpop.f32.mrb[8].mxu1 }
 0x23f   : > { %v2475_v6 = vadd.f32 %v2429_v4, %v3161_v62  ;;  %v1348_v9 = vpop.f32.mrb[9].mxu1  ;;  %2438 = vmatpush3.bf16.msra.mxu0 %v1570_v25  ;;  %v1572_v10 = vpack.c.bf16 %v1482_v60, %v1481_v57  ;;  %v1473_v60 = vpop.permute.xlu1 %1472 }
 0x240   : > { %v2476_v12 = vadd.f32 %v3161_v62, %v1348_v9  ;;  %v2430_v13 = vpop.f32.mrb[10].mxu1  ;;  %v1571_v14 = vpack.c.bf16 %v1480_v1, %v1479_v61 }
 0x241   : > { %v1389_v16 = vmax.f32 %v2475_v6, 0.0  ;;  %v2477_v18 = vadd.f32 %v2430_v13, %v3161_v62  ;;  %v1351_v19 = vpop.f32.mrb[11].mxu1 }
 0x242   : > { %v1387_v15 = vmax.f32 %v2476_v12, 0.0  ;;  %v2478_v63 = vadd.f32 %v3161_v62, %v1351_v19  ;;  %2439 = vmatprep.subr.bf16.mxu0 %v1571_v14  ;;  %v1749_v12 = vadd.f32 %v3205_v42, %v3063_v38 }
 0x243   : > { %v1390_v0 = vmax.f32 %v2477_v18, 0.0  ;;  %2440 = vmatpush3.bf16.msra.mxu0 %v1571_v14  ;;  %v1485_v22 = vmul.f32 %v1448_v5, %v1389_v16  ;;  %v1804_v21 = vpop.permute.xlu1 %1803  ;;  %v1764_v14 = vmax.f32 %v1748_v52, 0.0 }
 0x244   : > { %v1388_v17 = vmax.f32 %v2478_v63, 0.0  ;;  %2441 = vmatprep.subr.bf16.mxu0 %v1572_v10  ;;  %v1483_v26 = vmul.f32 %v1438_v36, %v1387_v15  ;;  %v1765_v19 = vmax.f32 %v1749_v12, 0.0 }
 0x245   : > { %v1486_v23 = vmul.f32 %v1453_v11, %v1390_v0  ;;  %v1750_v11 = vadd.f32 %v3205_v42, %v3057_v34  ;;  %v1754_v34 = vadd.f32 %v3205_v42, %v3069_v44  ;;  %v1753_v44 = vadd.f32 %v3205_v42, %v3075_v48 }
 0x246   : > { %v1484_v27 = vmul.f32 %v1443_v46, %v1388_v17  ;;  %v2433_v25 = vpop.f32.mrb[12].mxu1  ;;  %v1468_v46 = vpop.permute.xlu0 %1467 }
 0x247   : > { %v2479_v30 = vadd.f32 %v2433_v25, %v3161_v62  ;;  %v1364_v31 = vpop.f32.mrb[13].mxu1  ;;  %2442 = vmatpush3.bf16.msra.mxu0 %v1572_v10  ;;  %v1574_v32 = vpack.c.bf16 %v1486_v23, %v1485_v22  ;;  %v1766_v13 = vmax.f32 %v1750_v11, 0.0 }
 0x248   : > { %v2480_v39 = vadd.f32 %v3161_v62, %v1364_v31  ;;  %v2434_v40 = vpop.f32.mrb[14].mxu1  ;;  %v1573_v41 = vpack.c.bf16 %v1484_v27, %v1483_v26 }
 0x249   : > { %v1393_v49 = vmax.f32 %v2479_v30, 0.0  ;;  %v2481_v50 = vadd.f32 %v2434_v40, %v3161_v62  ;;  %v1367_v51 = vpop.f32.mrb[15].mxu1  ;;  %v1770_v30 = vmax.f32 %v1754_v34, 0.0 }
 0x24a   : > { %v1391_v54 = vmax.f32 %v2480_v39, 0.0  ;;  %v2482_v57 = vadd.f32 %v3161_v62, %v1367_v51  ;;  %2443 = vmatprep.subr.bf16.mxu0 %v1573_v41  ;;  %v1799_v28 = vpop.permute.xlu0 %1798  ;;  %v1814_v62 = vpop.permute.xlu1 %1813  ;;  %v1768_v39 = vmax.f32 %v1752_v37, 0.0  ;;  %v1762_v37 = vadd.f32 %v3205_v42, %v3093_v2 }
 0x24b   : > { %v1394_v36 = vmax.f32 %v2481_v50, 0.0  ;;  %2444 = vmatpush3.bf16.msra.mxu0 %v1573_v41  ;;  %v1489_v1 = vmul.f32 %v1468_v46, %v1393_v49  ;;  %v1876_v0 = vmul.f32 %v1799_v28, %v1764_v14  ;;  %v1759_v28 = vadd.f32 %v3205_v42, %v3083_v56 }
 0x24c   : > { %v1392_v61 = vmax.f32 %v2482_v57, 0.0  ;;  %2445 = vmatprep.subr.bf16.mxu0 %v1574_v32  ;;  %v1487_v5 = vmul.f32 %v1458_v20, %v1391_v54  ;;  %v1755_v20 = vadd.f32 %v3205_v42, %v3071_v45  ;;  %v1769_v54 = vmax.f32 %v1753_v44, 0.0 }
 0x24d   : > { %v1490_v4 = vmul.f32 %v1473_v60, %v1394_v36  ;;  %v1758_v60 = vadd.f32 %v3205_v42, %v3081_v55  ;;  %v1757_v55 = vadd.f32 %v3205_v42, %v3087_v59  ;;  %v1761_v2 = vadd.f32 %v3205_v42, %v3099_v8 }
 0x24e   : > { %v1488_v6 = vmul.f32 %v1463_v24, %v1392_v61  ;;  %v1809_v33 = vpop.permute.xlu0 %1808  ;;  %v1824_v53 = vpop.permute.xlu1 %1823  ;;  %v1877_v24 = vmul.f32 %v1804_v21, %v1765_v19  ;;  %v1771_v48 = vmax.f32 %v1755_v20, 0.0  ;;  %v1775_v19 = vmax.f32 %v1759_v28, 0.0 }
 0x24f   : > { %2446 = vmatpush3.bf16.msra.mxu0 %v1574_v32  ;;  %v1576_v9 = vpack.c.bf16 %v1490_v4, %v1489_v1  ;;  %v1878_v63 = vmul.f32 %v1809_v33, %v1766_v13  ;;  %v1756_v4 = vadd.f32 %v3205_v42, %v3085_v58  ;;  %v1760_v20 = vadd.f32 %v3205_v42, %v3097_v7 }
 0x250   : > { %v1575_v10 = vpack.c.bf16 %v1488_v6, %v1487_v5 }
 0x251   : > { %v1772_v14 = vmax.f32 %v1756_v4, 0.0 }
 0x252   : > { %2447 = vmatprep.subr.bf16.mxu0 %v1575_v10  ;;  %v1819_v43 = vpop.permute.xlu0 %1818  ;;  %v1834_v15 = vpop.permute.xlu1 %1833 }
 0x253   : > { %2448 = vmatpush3.bf16.msra.mxu0 %v1575_v10  ;;  %v1880_v1 = vmul.f32 %v1819_v43, %v1768_v39  ;;  %v1883_v10 = vmul.f32 %v1834_v15, %v1771_v48  ;;  %v1773_v15 = vmax.f32 %v1757_v55, 0.0 }
 0x254   : > { %2449 = vmatprep.subr.bf16.mxu0 %v1576_v9 }
 0x256   : > { %v1829_v16 = vpop.permute.xlu0 %1828  ;;  %v1844_v40 = vpop.permute.xlu1 %1843 }
 0x257   : > { %2450 = vmatpush3.bf16.msra.mxu0 %v1576_v9  ;;  %v1882_v46 = vmul.f32 %v1829_v16, %v1770_v30 }
 0x25a   : > { %2452 = vmatmul.mubr.msk.bf16.vlgmr.msra.gmra.mrb[16].mxu0 %vm3128_vm13, %v2667_v29  ;;  %v1839_v26 = vpop.permute.xlu0 %1838  ;;  %v1854_v11 = vpop.permute.xlu1 %1853 }
 0x25b   : > { %2455 = vmatprep.mubr.msk.bf16.mxu0 %vm3132_vm0, %v2667_v29  ;;  %v1887_v44 = vmul.f32 %v1854_v11, %v1775_v19 }
 0x25e   : > { %v1849_v5 = vpop.permute.xlu0 %1848 }
 0x262   : > { %2456 = vmatmul.mubr.msk.bf16.gmra.mrb[20].mxu0 %vm3136_vm3, %v2667_v29  ;;  %v1859_v59 = vpop.permute.xlu0 %1858 }
 0x263   : > { %2459 = vmatprep.mubr.msk.bf16.mxu0 %vm3140_vm6, %v2667_v29 }
 0x266   : > { %v1869_v48 = vpop.permute.xlu0 %1868 }
 0x26a   : > { %2460 = vmatmul.mubr.msk.bf16.gmra.mrb[24].mxu0 %vm3144_vm9, %v2667_v29 }
 0x26b   : > { %2463 = vmatprep.mubr.msk.bf16.mxu0 %vm3148_vm12, %v2667_v29 }
 0x272   : > { %2464 = vmatmul.mubr.msk.bf16.gmra.mrb[28].mxu0 %vm3152_vm1, %v2667_v29  ;;  %v1751_v29 = vadd.f32 %v3205_v42, %v3059_v35  ;;  %v3224_v35 = vld [vmem:[%s611_s22] ss:$0 sm:$0xff] }
 0x274   : > { %v1767_v18 = vmax.f32 %v1751_v29, 0.0  ;;  %v1774_v29 = vmax.f32 %v1758_v60, 0.0 }
 0x276   : > { %v1879_v38 = vmul.f32 %v1814_v62, %v1767_v18  ;;  %v1881_v62 = vmul.f32 %v1824_v53, %v1769_v54 }
 0x32d   : > { %v2453_v17 = vpop.f32.mrb[16].mxu0 }
 0x32e   : > { %v1894_v22 = vadd.f32 %v2453_v17, %v1878_v63  ;;  %v1611_v23 = vpop.f32.mrb[17].mxu0 }
 0x32f   : > { %v1892_v27 = vadd.f32 %v1876_v0, %v1611_v23  ;;  %v2454_v25 = vpop.f32.mrb[18].mxu0  ;;  %v1886_v0 = vmul.f32 %v1849_v5, %v1774_v29 }
 0x330   : > { %v1917_v31 = vmul.f32 %v3224_v35, %v1894_v22  ;;  %v1895_v32 = vadd.f32 %v2454_v25, %v1879_v38  ;;  %v1614_v45 = vpop.f32.mrb[19].mxu0  ;;  %v1884_v38 = vmul.f32 %v1839_v26, %v1772_v14  ;;  %v1864_v22 = vpop.permute.xlu1 %1863 }
 0x331   : > { %v1915_v41 = vmul.f32 %v3224_v35, %v1892_v27  ;;  %v1893_v49 = vadd.f32 %v1877_v24, %v1614_v45  ;;  %v1763_v27 = vadd.f32 %v3205_v42, %v3095_v3  ;;  %v1778_v45 = vmax.f32 %v1762_v37, 0.0 }
 0x332   : > { %v3240_v50 = vadd.f32 %v3235_v47, %v1917_v31  ;;  %v1918_v51 = vmul.f32 %v3224_v35, %v1895_v32  ;;  %v1885_v31 = vmul.f32 %v1844_v40, %v1773_v15 }
 0x333   : > { %v3244_v57 = vadd.f32 %v3235_v47, %v1915_v41  ;;  %v1916_v36 = vmul.f32 %v3224_v35, %v1893_v49  ;;  %v1776_v49 = vmax.f32 %v1760_v20, 0.0 }
 0x334   : > { %v3250_v61 = vadd.f32 %v3235_v47, %v1918_v51  ;;  %v1874_v8 = vpop.permute.xlu1 %1873 }
 0x335   : > { %v3255_v6 = vadd.f32 %v3235_v47, %v1916_v36  ;;  %v2457_v9 = vpop.f32.mrb[20].mxu0  ;;  %v1779_v36 = vmax.f32 %v1763_v27, 0.0  ;;  %v1888_v5 = vmul.f32 %v1859_v59, %v1776_v49  ;;  %v1959_v15 = vmax.f32 (!%p2267_p4), %v3244_v57, 0.0 }
 0x336   : > { %v1898_v21 = vadd.f32 %v2457_v9, %v1882_v46  ;;  %v1627_v33 = vpop.f32.mrb[21].mxu0  ;;  %v1777_v46 = vmax.f32 %v1761_v2, 0.0 }
 0x337   : > { %v1896_v43 = vadd.f32 %v1880_v1, %v1627_v33  ;;  %v2458_v52 = vpop.f32.mrb[22].mxu0  ;;  %v1890_v1 = vmul.f32 %v1869_v48, %v1778_v45  ;;  %v1891_v28 = vmul.f32 %v1874_v8, %v1779_v36  ;;  %v1960_v59 = vmax.f32 (!%p2267_p4), %v3255_v6, 0.0 }
 0x338   : > { %v1921_v58 = vmul.f32 %v3224_v35, %v1898_v21  ;;  %v1899_v12 = vadd.f32 %v2458_v52, %v1883_v10  ;;  %v1630_v13 = vpop.f32.mrb[23].mxu0 }
 0x339   : > { %v1919_v16 = vmul.f32 %v3224_v35, %v1896_v43  ;;  %v1897_v18 = vadd.f32 %v1881_v62, %v1630_v13  ;;  %v1889_v62 = vmul.f32 %v1864_v22, %v1777_v46 }
 0x33a   : > { %v3264_v56 = vadd.f32 %v3235_v47, %v1921_v58  ;;  %v1922_v53 = vmul.f32 %v3224_v35, %v1899_v12 }
 0x33b   : > { %v3268_v63 = vadd.f32 %v3235_v47, %v1919_v16  ;;  %v1920_v34 = vmul.f32 %v3224_v35, %v1897_v18 }
 0x33c   : > { %v3274_v17 = vadd.f32 %v3235_v47, %v1922_v53 }
 0x33d   : > { %v3279_v23 = vadd.f32 %v3235_v47, %v1920_v34  ;;  %v2461_v24 = vpop.f32.mrb[24].mxu0  ;;  %v1961_v34 = vmax.f32 (!%p2267_p4), %v3240_v50, 0.0  ;;  %v1963_v37 = vmax.f32 (!%p2267_p4), %v3268_v63, 0.0 }
 0x33e   : > { %v1902_v25 = vadd.f32 %v2461_v24, %v1886_v0  ;;  %v1643_v30 = vpop.f32.mrb[25].mxu0  ;;  %v1962_v0 = vmax.f32 (!%p2267_p4), %v3250_v61, 0.0  ;;  %v1966_v20 = vmax.f32 (!%p2267_p4), %v3274_v17, 0.0 }
 0x33f   : > { %v1900_v32 = vadd.f32 %v1884_v38, %v1643_v30  ;;  %v2462_v26 = vpop.f32.mrb[26].mxu0  ;;  %v1964_v38 = vmax.f32 (!%p2267_p4), %v3279_v23, 0.0 }
 0x340   : > { %v1925_v7 = vmul.f32 %v3224_v35, %v1902_v25  ;;  %v1903_v39 = vadd.f32 %v2462_v26, %v1887_v44  ;;  %v1646_v41 = vpop.f32.mrb[27].mxu0  ;;  %v1976_v22 = vpack.c.bf16 (!%p2267_p4), %v1962_v0, %v1961_v34 }
 0x341   : > { %v1923_v51 = vmul.f32 %v3224_v35, %v1900_v32  ;;  %v1901_v54 = vadd.f32 %v1885_v31, %v1646_v41  ;;  %v1977_v27 = vpack.c.bf16 (!%p2267_p4), %v1964_v38, %v1963_v37 }
 0x342   : > { %v3288_v3 = vadd.f32 %v3235_v47, %v1925_v7  ;;  %v1926_v40 = vmul.f32 %v3224_v35, %v1903_v39  ;;  %1984 = vst [vmem:[#allocation2 + $0x8] sm:$0xff] (!%p2267_p4), %v1976_v22 }
 0x343   : > { %v3292_v42 = vadd.f32 %v3235_v47, %v1923_v51  ;;  %v1924_v60 = vmul.f32 %v3224_v35, %v1901_v54  ;;  %1985 = vst [vmem:[#allocation2 + $0x10] sm:$0xff] (!%p2267_p4), %v1977_v27 }
 0x344   : > { %v3296_v4 = vadd.f32 %v3235_v47, %v1926_v40  ;;  %v1969_v30 = vmax.f32 (!%p2267_p4), %v3288_v3, 0.0 }
 0x345   : > { %v3299_v9 = vadd.f32 %v3235_v47, %v1924_v60  ;;  %v2465_v10 = vpop.f32.mrb[28].mxu0  ;;  %v1967_v24 = vmax.f32 (!%p2267_p4), %v3292_v42, 0.0 }
 0x346   : > { %v1906_v21 = vadd.f32 %v2465_v10, %v1890_v1  ;;  %v1659_v33 = vpop.f32.mrb[29].mxu0  ;;  %v1970_v31 = vmax.f32 (!%p2267_p4), %v3296_v4, 0.0 }
 0x347   : > { %v1904_v55 = vadd.f32 %v1888_v5, %v1659_v33  ;;  %v2466_v11 = vpop.f32.mrb[30].mxu0  ;;  %1958 = sbr.rel (%p2267_p4) target bundleno = 852 (0x354), region = 92  ;;  %v1968_v44 = vmax.f32 (!%p2267_p4), %v3299_v9, 0.0 }
 0x348   : > { %v1929_v43 = vmul.f32 %v3224_v35, %v1906_v21  ;;  %v1907_v52 = vadd.f32 %v2466_v11, %v1891_v28  ;;  %v1662_v29 = vpop.f32.mrb[31].mxu0  ;;  %v1980_v7 = vpack.c.bf16 (!%p2267_p4), %v1970_v31, %v1969_v30 }
 0x349   : > { %v1927_v58 = vmul.f32 %v3224_v35, %v1904_v55  ;;  %v1905_v12 = vadd.f32 %v1889_v62, %v1662_v29  ;;  %v1979_v2 = vpack.c.bf16 (!%p2267_p4), %v1968_v44, %v1967_v24 }
 0x34a   : > { %v1952_v13 = vadd.f32 %v3235_v47, %v1929_v43  ;;  %v1930_v14 = vmul.f32 %v3224_v35, %v1907_v52  ;;  %1988 = vst [vmem:[#allocation2 + $0x28] sm:$0xff] (!%p2267_p4), %v1980_v7 }
 0x34b   : > { %v1950_v16 = vadd.f32 %v3235_v47, %v1927_v58  ;;  %v1928_v18 = vmul.f32 %v3224_v35, %v1905_v12  ;;  %v1965_v35 = vmax.f32 (!%p2267_p4), %v3264_v56, 0.0  ;;  %1987 = vst [vmem:[#allocation2 + $0x20] sm:$0xff] (!%p2267_p4), %v1979_v2 }
 0x34c   : > { %v1953_v19 = vadd.f32 %v3235_v47, %v1930_v14  ;;  %v1973_v45 = vmax.f32 (!%p2267_p4), %v1952_v13, 0.0 }
 0x34d   : > { %v1951_v53 = vadd.f32 %v3235_v47, %v1928_v18  ;;  %v1975_v47 = vpack.c.bf16 (!%p2267_p4), %v1960_v59, %v1959_v15  ;;  %v1978_v25 = vpack.c.bf16 (!%p2267_p4), %v1966_v20, %v1965_v35  ;;  %v1971_v32 = vmax.f32 (!%p2267_p4), %v1950_v16, 0.0 }
 0x34e   : > { %v1974_v39 = vmax.f32 %v1953_v19, 0.0 }
 0x34f   : > { %1983 = vst [vmem:[#allocation2] sm:$0xff] %v1975_v47  ;;  %v1972_v26 = vmax.f32 %v1951_v53, 0.0  ;;  %1986 = vst [vmem:[#allocation2 + $0x18] sm:$0xff] %v1978_v25 }
 0x350   : > { %v1982_v49 = vpack.c.bf16 %v1974_v39, %v1973_v45 }
 0x351   : > { %v1981_v41 = vpack.c.bf16 %v1972_v26, %v1971_v32 }
 0x352   : > { %1990 = vst [vmem:[#allocation2 + $0x38] sm:$0xff] %v1982_v49 }
 0x353   : > { %1989 = vst [vmem:[#allocation2 + $0x30] sm:$0xff] %v1981_v41 }
 0x354 PF: > { %p2268_p6 = scmp.ne.s32.totalorder %s2655_s25, 1 }
 0x355   : > { %1994 = vst [vmem:[#allocation9] sm:$0xff] (!%p2268_p6), %v3244_v57  ;;  %1995 = vst [vmem:[#allocation9 + $0x8] sm:$0xff] (!%p2268_p6), %v3255_v6 }
 0x356   : > { %1993 = sbr.rel (%p2268_p6) target bundleno = 861 (0x35d), region = 96  ;;  %1996 = vst [vmem:[#allocation9 + $0x10] sm:$0xff] (!%p2268_p6), %v3240_v50  ;;  %1997 = vst [vmem:[#allocation9 + $0x18] sm:$0xff] (!%p2268_p6), %v3250_v61 }
 0x357   : > { %1998 = vst [vmem:[#allocation9 + $0x20] sm:$0xff] (!%p2268_p6), %v3268_v63  ;;  %1999 = vst [vmem:[#allocation9 + $0x28] sm:$0xff] (!%p2268_p6), %v3279_v23 }
 0x358   : > { %2000 = vst [vmem:[#allocation9 + $0x30] sm:$0xff] (!%p2268_p6), %v3264_v56  ;;  %2001 = vst [vmem:[#allocation9 + $0x38] sm:$0xff] (!%p2268_p6), %v3274_v17 }
 0x359   : > { %2002 = vst [vmem:[#allocation9 + $0x40] sm:$0xff] (!%p2268_p6), %v3292_v42  ;;  %2003 = vst [vmem:[#allocation9 + $0x48] sm:$0xff] (!%p2268_p6), %v3299_v9 }
 0x35a   : > { %2004 = vst [vmem:[#allocation9 + $0x50] sm:$0xff] (!%p2268_p6), %v3288_v3  ;;  %2005 = vst [vmem:[#allocation9 + $0x58] sm:$0xff] (!%p2268_p6), %v3296_v4 }
 0x35b   : > { %2006 = vst [vmem:[#allocation9 + $0x60] sm:$0xff] (!%p2268_p6), %v1950_v16  ;;  %2007 = vst [vmem:[#allocation9 + $0x68] sm:$0xff] (!%p2268_p6), %v1951_v53 }
 0x35c   : > { %2008 = vst [vmem:[#allocation9 + $0x70] sm:$0xff] (!%p2268_p6), %v1952_v13  ;;  %2009 = vst [vmem:[#allocation9 + $0x78] sm:$0xff] (!%p2268_p6), %v1953_v19 }
 0x35d PF: > { %s3419_s6 = sadd.s32 4294967295, %s2663_s27   ;;  %s2668_s20 = smov [#allocation9]  }
 0x35e   : > { %p3337_p10 = scmp.eq.s32.totalorder %s3419_s6, 1  ;;  %s2016_s22 = sshll.u32 %s2668_s20, 4  ;;  %s2017_s22 = int_to_ptr.vmem [resolvable:$true] %s2016_s22 }
 0x35f   : > { %s2607_s21 = scalar_lea.vmem %s2017_s22, 2048  ;;  %p2614_p0 = scmp.lt.s32.totalorder %s2017_s22, %s2017_s22 }
 0x360   : > { %p2608_p11 = scmp.ne.s32.totalorder %s2017_s22, %s2607_s21  ;;  %p2615_p1 = scmp.lt.s32.totalorder %s2607_s21, %s2607_s21 }
 0x362   : > { %p2609_p12 = pnand %p2608_p11, %p3337_p10  ;;  %p2616_p2 = por %p2615_p1, %p2614_p0 }
 0x364   : > { %p2610_p13 = pneg %p2609_p12 }
 0x366   : > { %p2617_p5 = pnand %p2616_p2, %p2610_p13 }
 0x368   : > { %2620 = shalt.err (!%p2617_p5)
}
 0x369   : > { %s3421_s17 = sld [smem:[#allocation16_spill]] }
 0x36f   : > { %s2621_s23 = scalar_lea.hbm %s3421_s17, 2048 }
 0x370   : > { %p2622_p7 = scmp.ne.s32.totalorder %s3421_s17, %s2621_s23  ;;  %p2627_p3 = scmp.lt.u32.totalorder %s2621_s23, %s3421_s17 }
 0x372   : > { %p2623_p9 = pnand %p2622_p7, %p3337_p10 }
 0x374   : > { %p2624_p8 = pneg %p2623_p9 }
 0x376   : > { %p2629_p4 = pnand %p2627_p3, %p2624_p8 }
 0x378   : > { %2632 = shalt.err (!%p2629_p4)
}
 0x379   : > { %s2669_s2 = smov 128   ;;  %s2670_s19 = smov 8  }
 0x37a   : > { %2504 = dma.vmem_to_hbm [thread:$0]  (%p3337_p10), %s2017_s22, 2048, %s3421_s17, [#allocation8], %s2669_s2, %s2669_s2, %s2670_s19  }
 0x37b   : > { %2650 = dma.done.wait (%p3337_p10), [#allocation8], 2048  }
 0x37c   : > { %2652 = vsyncadd (%p3337_p10), [#allocation8], 4294965248 }
 0x37d PF: > { %s25_s27 = sadd.s32 1, %s2663_s27   ;;  %s3422_s25 = sld [smem:[#allocation12_spill]] }
 0x37e   : > { %p22_p6 = scmp.ge.s32.totalorder %s25_s27, 4   ;;  %s3423_s26 = sld [smem:[#allocation13_spill]] }
 0x380   :  { %24 = sbr.rel (!%p22_p6) target bundleno = 7 (0x7), region = 152 }
 0x387   :  { %2032 = vsyncpa [#allocation7], 1 }
 0x388   :  { %2034 = vsyncpa [#allocation7 + $0x1], 1 }
 0x389   :  { %2035 = vsyncpa [#allocation8], 1 }
 0x38a   :  { %2037 = vsyncpa [#allocation8 + $0x1], 1 }

</bundles_post_ra>
